<compile_context>
chip_gen: v5e
topology: v5e:2x2
jax: 0.10.0
libtpu: 0.0.40
codegen_flags: <defaults>
</compile_context>

<pallas_src>
import numpy as np
import jax
import jax.numpy as jnp
from jax.experimental import pallas as pl
from jax.experimental.pallas import tpu as pltpu

SOS_token = 1
UNK_token = 2

LANE = 128  # TPU lane width


# ----------------------------------------------------------------------------
# Pallas kernel: the serial GRU recurrence only.
# ----------------------------------------------------------------------------
def _gru_recurrence_kernel(gi_ref, whh_ref, bhn_ref, h0_ref, h_all_ref):
    """Shapes (Hp = hidden padded to a multiple of 128):
         gi_ref   : (n_steps, 3*Hp) input-side gates, b_ih + b_hr/b_hz pre-folded
         whh_ref  : (Hp, 3*Hp)      hidden-side GRU weights (no bias)
         bhn_ref  : (1, Hp)         n-gate hidden bias (must stay inside r*(...))
         h0_ref   : (1, Hp)         initial hidden = i2h(decode_embed), padded
         h_all_ref: (n_steps, Hp)   all hidden states (output)
    """
    n_steps = gi_ref.shape[0]
    hp = h0_ref.shape[1]

    bhn = bhn_ref[...]
    h = h0_ref[...]
    hs = []
    for t in range(n_steps):  # static, fully unrolled (n_steps is tiny)
        gi = gi_ref[pl.ds(t, 1), :]                                   # (1, 3*Hp)
        # W_hh is streamed from VMEM into the MXU each step; we intentionally do
        # NOT hoist whh_ref[...] into a loop-carried value (192 KiB ~ 48 vregs).
        gh = jnp.dot(h, whh_ref[...], preferred_element_type=jnp.float32)
        # PyTorch GRU gate order r, z, n; slices land on 128-lane boundaries.
        r = jax.nn.sigmoid(gi[:, 0:hp] + gh[:, 0:hp])
        zg = jax.nn.sigmoid(gi[:, hp:2 * hp] + gh[:, hp:2 * hp])
        n = jnp.tanh(gi[:, 2 * hp:3 * hp] + r * (gh[:, 2 * hp:3 * hp] + bhn))
        h = n + zg * (h - n)
        hs.append(h)
    # One consolidated, unmasked lane-dense store instead of n_steps masked ones.
    h_all_ref[...] = jnp.concatenate(hs, axis=0)


# ----------------------------------------------------------------------------
# One-time (per params / n_steps) precompute of all static, padded operands.
# ----------------------------------------------------------------------------
def _pad_gate_cols(a, H, Hp):
    """(rows, 3H) -> (rows, 3*Hp); gate g placed at columns [g*Hp, g*Hp + H)."""
    rows = a.shape[0]
    out = jnp.zeros((rows, 3 * Hp), a.dtype)
    for g in range(3):
        out = out.at[:, g * Hp:g * Hp + H].set(a[:, g * H:(g + 1) * H])
    return out


def precompute_static(params, n_steps):
    """Everything depending only on params / n_steps. Call once, reuse per forward."""
    H = params["embedding"].shape[1]
    V = params["embedding"].shape[0]
    I = params["w_i2h"].shape[0]
    Hp = max(LANE, pl.cdiv(H, LANE) * LANE)

    # Static token sequence (word_dropout = 1.0): [SOS, UNK, UNK, ...]
    tokens = jnp.array([SOS_token] + [UNK_token] * (n_steps - 1), dtype=jnp.int32)
    e = jax.nn.relu(params["embedding"][tokens])                      # (n_steps, H)

    # Token-side input gates, with b_ih and the r/z hidden biases folded in.
    # (The n-gate hidden bias b_hn must stay inside r*(...) -> kept separate.)
    gi_tok = e @ params["w_ih"][:H] + params["b_ih"]                  # (n_steps, 3H)
    gi_tok = gi_tok.at[:, :2 * H].add(params["b_hh"][:, :2 * H])

    static = {
        "H": H, "Hp": Hp, "V": V, "I": I, "n_steps": n_steps,
        # per-call matmul operands (already padded so no per-call scatter work)
        "w_c2h": params["w_c2h"], "b_c2h": params["b_c2h"],
        "w_i2h_pad": jnp.zeros((I, Hp), jnp.float32).at[:, :H].set(params["w_i2h"]),
        "b_i2h_pad": jnp.zeros((1, Hp), jnp.float32).at[:, :H].set(params["b_i2h"]),
        "gi_tok_pad": _pad_gate_cols(gi_tok, H, Hp),                  # (n_steps, 3Hp)
        "w_ih_de_pad": _pad_gate_cols(params["w_ih"][H:], H, Hp),     # (I, 3Hp)
        # kernel operands
        "whh_pad": jnp.zeros((Hp, 3 * Hp), jnp.float32).at[:H, :].set(
            _pad_gate_cols(params["w_hh"], H, Hp)),                   # (Hp, 3Hp)
        "bhn_pad": jnp.zeros((1, Hp), jnp.float32).at[:, :H].set(
            params["b_hh"][:, 2 * H:]),                               # (1, Hp)
        # output projection operands (padded so h_all_pad is used directly)
        "w_out_h_pad": jnp.zeros((Hp, V), jnp.float32).at[:H, :].set(
            params["w_out"][:H]),                                     # (Hp, V)
        "w_out_de": params["w_out"][H:],                              # (I, V)
        "b_out": params["b_out"],                                     # (1, V)
    }
    return jax.tree_util.tree_map(
        lambda x: x if isinstance(x, int) else jax.device_put(x), static)


# ----------------------------------------------------------------------------
# Per-call forward (jitted as a single executable).
# ----------------------------------------------------------------------------
def _forward(static, z, condition):
    Hp = static["w_i2h_pad"].shape[1]
    n_steps = static["gi_tok_pad"].shape[0]

    # decode_embed and everything batched over time (plain JAX, runs on the MXU,
    # can be megacore-sharded on v7x; the serial recurrence is single-core anyway).
    squashed = condition @ static["w_c2h"] + static["b_c2h"]
    de = jnp.concatenate([z, squashed], axis=1)                       # (1, I)
    h0_pad = de @ static["w_i2h_pad"] + static["b_i2h_pad"]           # (1, Hp)
    gi_pad = static["gi_tok_pad"] + de @ static["w_ih_de_pad"]        # (n_steps, 3Hp)

    h_all_pad = pl.pallas_call(
        _gru_recurrence_kernel,
        out_shape=jax.ShapeDtypeStruct((n_steps, Hp), jnp.float32),
        grid_spec=pltpu.PrefetchScalarGridSpec(
            num_scalar_prefetch=0,
            grid=(1,),
            in_specs=[
                pl.BlockSpec((n_steps, 3 * Hp), lambda i: (0, 0)),    # gi (padded)
                pl.BlockSpec((Hp, 3 * Hp), lambda i: (0, 0)),         # W_hh (padded)
                pl.BlockSpec((1, Hp), lambda i: (0, 0)),              # b_hn (padded)
                pl.BlockSpec((1, Hp), lambda i: (0, 0)),              # h0   (padded)
            ],
            out_specs=pl.BlockSpec((n_steps, Hp), lambda i: (0, 0)),
        ),
        compiler_params=pltpu.CompilerParams(dimension_semantics=("arbitrary",)),
    )(gi_pad, static["whh_pad"], static["bhn_pad"], h0_pad)

    # Deferred, batched output projection (one matmul over all steps).
    out = (h_all_pad @ static["w_out_h_pad"]
           + (de @ static["w_out_de"] + static["b_out"]))             # (n_steps, V)
    return out                                                        # == outputs.squeeze(1)


decoder_forward_pallas = jax.jit(_forward)


# ----------------------------------------------------------------------------
# Pure-JAX reference (mirrors the PyTorch forward exactly) for correctness.
# ----------------------------------------------------------------------------
def decoder_forward_ref(params, z, condition, n_steps):
    H = params["embedding"].shape[1]
    squashed = condition @ params["w_c2h"] + params["b_c2h"]
    de = jnp.concatenate([z, squashed], axis=1)
    h = de @ params["w_i2h"] + params["b_i2h"]
    tokens = [SOS_token] + [UNK_token] * (n_steps - 1)
    outs = []
    for t in range(n_steps):
        e = jax.nn.relu(params["embedding"][tokens[t]])[None, :]
        x = jnp.concatenate([e, de], axis=1)
        gi = x @ params["w_ih"] + params["b_ih"]
        gh = h @ params["w_hh"] + params["b_hh"]
        r = jax.nn.sigmoid(gi[:, :H] + gh[:, :H])
        zg = jax.nn.sigmoid(gi[:, H:2 * H] + gh[:, H:2 * H])
        n = jnp.tanh(gi[:, 2 * H:] + r * gh[:, 2 * H:])
        h = (1.0 - zg) * n + zg * h
        o = jnp.concatenate([h, de], axis=1) @ params["w_out"] + params["b_out"]
        outs.append(o)
    return jnp.concatenate(outs, axis=0)


def init_params(key, z_size, n_conditions, condition_size, hidden_size, output_size):
    """Deterministic synthetic parameters (PyTorch (out,in) weights stored transposed)."""
    I = z_size + condition_size
    H = hidden_size
    V = output_size
    ks = jax.random.split(key, 12)
    u = lambda k, shape, s: jax.random.uniform(k, shape, jnp.float32, -s, s)
    params = {
        "embedding": jax.random.normal(ks[0], (V, H), jnp.float32),
        # c2h: Linear(n_conditions -> condition_size)
        "w_c2h": u(ks[1], (n_conditions, condition_size), 1.0 / np.sqrt(n_conditions)),
        "b_c2h": u(ks[2], (1, condition_size), 1.0 / np.sqrt(n_conditions)),
        # i2h: Linear(I -> H)
        "w_i2h": u(ks[3], (I, H), 1.0 / np.sqrt(I)),
        "b_i2h": u(ks[4], (1, H), 1.0 / np.sqrt(I)),
        # GRU(H+I -> H), gate order r, z, n
        "w_ih": u(ks[5], (H + I, 3 * H), 1.0 / np.sqrt(H)),
        "b_ih": u(ks[6], (1, 3 * H), 1.0 / np.sqrt(H)),
        "w_hh": u(ks[7], (H, 3 * H), 1.0 / np.sqrt(H)),
        "b_hh": u(ks[8], (1, 3 * H), 1.0 / np.sqrt(H)),
        # out: Linear(H+I -> V)
        "w_out": u(ks[9], (H + I, V), 1.0 / np.sqrt(H + I)),
        "b_out": u(ks[10], (1, V), 1.0 / np.sqrt(H + I)),
    }
    return params


if __name__ == "__main__":
    z_size, n_conditions, condition_size = 16, 8, 4
    hidden_size, output_size = 32, 40
    n_steps = 8

    key = jax.random.PRNGKey(0)
    kp, kz, kc = jax.random.split(key, 3)
    params = init_params(kp, z_size, n_conditions, condition_size, hidden_size, output_size)

    z = jax.random.normal(kz, (1, z_size), jnp.float32)
    condition = jax.random.normal(kc, (1, n_conditions), jnp.float32)

    # One-time static precompute (keyed by params / n_steps); per-call path is jitted.
    static = precompute_static(params, n_steps)

    out = decoder_forward_pallas(static, z, condition)
    out = jax.block_until_ready(out)

    ref = decoder_forward_ref(params, z, condition, n_steps)
    assert out.shape == (n_steps, output_size)
    np.testing.assert_allclose(np.asarray(out), np.asarray(ref), rtol=1e-4, atol=1e-4)

    print("KERNEL_OK")
</pallas_src>

<mosaic_0001>
module attributes {stable_mosaic.version = 11 : i64} {
  func.func @_gru_recurrence_kernel(%arg0: i32, %arg1: memref<8x384xf32, #tpu.memory_space<vmem>>, %arg2: memref<128x384xf32, #tpu.memory_space<vmem>>, %arg3: memref<1x128xf32, #tpu.memory_space<vmem>>, %arg4: memref<1x128xf32, #tpu.memory_space<vmem>>, %arg5: memref<8x128xf32, #tpu.memory_space<vmem>>) attributes {dimension_semantics = [#tpu.dimension_semantics<arbitrary>], iteration_bounds = array<i64: 1>, scalar_prefetch = 0 : i64, scratch_operands = 0 : i64, tpu.core_type = #tpu.core_type<tc>, window_params = [{pipeline_mode = #tpu.pipeline_mode<synchronous>, transform_indices = @transform_0, window_bounds = array<i64: 8, 384>}, {pipeline_mode = #tpu.pipeline_mode<synchronous>, transform_indices = @transform_1, window_bounds = array<i64: 128, 384>}, {pipeline_mode = #tpu.pipeline_mode<synchronous>, transform_indices = @transform_2, window_bounds = array<i64: 1, 128>}, {pipeline_mode = #tpu.pipeline_mode<synchronous>, transform_indices = @transform_3, window_bounds = array<i64: 1, 128>}, {pipeline_mode = #tpu.pipeline_mode<synchronous>, transform_indices = @transform_4, window_bounds = array<i64: 8, 128>}]} {
    %c0 = arith.constant 0 : index
    %c0_0 = arith.constant 0 : index
    %0 = vector.load %arg3[%c0, %c0_0] : memref<1x128xf32, #tpu.memory_space<vmem>>, vector<1x128xf32>
    %c0_1 = arith.constant 0 : index
    %c0_2 = arith.constant 0 : index
    %1 = vector.load %arg4[%c0_1, %c0_2] : memref<1x128xf32, #tpu.memory_space<vmem>>, vector<1x128xf32>
    %c0_3 = arith.constant 0 : index
    %c0_4 = arith.constant 0 : index
    %2 = vector.load %arg1[%c0_3, %c0_4] : memref<8x384xf32, #tpu.memory_space<vmem>>, vector<1x384xf32>
    %c0_5 = arith.constant 0 : index
    %c0_6 = arith.constant 0 : index
    %3 = vector.load %arg2[%c0_5, %c0_6] : memref<128x384xf32, #tpu.memory_space<vmem>>, vector<128x384xf32>
    %cst = arith.constant dense<0.000000e+00> : vector<1x384xf32>
    %4 = tpu.matmul %1, %3, %cst {dimension_numbers = #tpu.dot_dimension_numbers<[1], [0], [0], [1], [0, 0, 1, 1], [], []>} : vector<1x128xf32>, vector<128x384xf32>, vector<1x384xf32> -> vector<1x384xf32>
    %5 = vector.extract_strided_slice %2 {offsets = [0, 0], sizes = [1, 128], strides = [1, 1]} : vector<1x384xf32> to vector<1x128xf32>
    %6 = vector.extract_strided_slice %4 {offsets = [0, 0], sizes = [1, 128], strides = [1, 1]} : vector<1x384xf32> to vector<1x128xf32>
    %7 = arith.addf %5, %6 : vector<1x128xf32>
    %8 = arith.negf %7 : vector<1x128xf32>
    %9 = math.exp %8 : vector<1x128xf32>
    %cst_7 = arith.constant 1.000000e+00 : f32
    %10 = vector.broadcast %cst_7 : f32 to vector<1x128xf32>
    %11 = arith.addf %10, %9 : vector<1x128xf32>
    %12 = arith.divf %10, %11 : vector<1x128xf32>
    %13 = vector.extract_strided_slice %2 {offsets = [0, 128], sizes = [1, 128], strides = [1, 1]} : vector<1x384xf32> to vector<1x128xf32>
    %14 = vector.extract_strided_slice %4 {offsets = [0, 128], sizes = [1, 128], strides = [1, 1]} : vector<1x384xf32> to vector<1x128xf32>
    %15 = arith.addf %13, %14 : vector<1x128xf32>
    %16 = arith.negf %15 : vector<1x128xf32>
    %17 = math.exp %16 : vector<1x128xf32>
    %cst_8 = arith.constant 1.000000e+00 : f32
    %18 = vector.broadcast %cst_8 : f32 to vector<1x128xf32>
    %19 = arith.addf %18, %17 : vector<1x128xf32>
    %20 = arith.divf %18, %19 : vector<1x128xf32>
    %21 = vector.extract_strided_slice %2 {offsets = [0, 256], sizes = [1, 128], strides = [1, 1]} : vector<1x384xf32> to vector<1x128xf32>
    %22 = vector.extract_strided_slice %4 {offsets = [0, 256], sizes = [1, 128], strides = [1, 1]} : vector<1x384xf32> to vector<1x128xf32>
    %23 = arith.addf %22, %0 : vector<1x128xf32>
    %24 = arith.mulf %12, %23 : vector<1x128xf32>
    %25 = arith.addf %21, %24 : vector<1x128xf32>
    %26 = math.tanh %25 : vector<1x128xf32>
    %27 = arith.subf %1, %26 : vector<1x128xf32>
    %28 = arith.mulf %20, %27 : vector<1x128xf32>
    %29 = arith.addf %26, %28 : vector<1x128xf32>
    %c1 = arith.constant 1 : index
    %c0_9 = arith.constant 0 : index
    %30 = vector.load %arg1[%c1, %c0_9] : memref<8x384xf32, #tpu.memory_space<vmem>>, vector<1x384xf32>
    %c0_10 = arith.constant 0 : index
    %c0_11 = arith.constant 0 : index
    %31 = vector.load %arg2[%c0_10, %c0_11] : memref<128x384xf32, #tpu.memory_space<vmem>>, vector<128x384xf32>
    %cst_12 = arith.constant dense<0.000000e+00> : vector<1x384xf32>
    %32 = tpu.matmul %29, %31, %cst_12 {dimension_numbers = #tpu.dot_dimension_numbers<[1], [0], [0], [1], [0, 0, 1, 1], [], []>} : vector<1x128xf32>, vector<128x384xf32>, vector<1x384xf32> -> vector<1x384xf32>
    %33 = vector.extract_strided_slice %30 {offsets = [0, 0], sizes = [1, 128], strides = [1, 1]} : vector<1x384xf32> to vector<1x128xf32>
    %34 = vector.extract_strided_slice %32 {offsets = [0, 0], sizes = [1, 128], strides = [1, 1]} : vector<1x384xf32> to vector<1x128xf32>
    %35 = arith.addf %33, %34 : vector<1x128xf32>
    %36 = arith.negf %35 : vector<1x128xf32>
    %37 = math.exp %36 : vector<1x128xf32>
    %cst_13 = arith.constant 1.000000e+00 : f32
    %38 = vector.broadcast %cst_13 : f32 to vector<1x128xf32>
    %39 = arith.addf %38, %37 : vector<1x128xf32>
    %40 = arith.divf %38, %39 : vector<1x128xf32>
    %41 = vector.extract_strided_slice %30 {offsets = [0, 128], sizes = [1, 128], strides = [1, 1]} : vector<1x384xf32> to vector<1x128xf32>
    %42 = vector.extract_strided_slice %32 {offsets = [0, 128], sizes = [1, 128], strides = [1, 1]} : vector<1x384xf32> to vector<1x128xf32>
    %43 = arith.addf %41, %42 : vector<1x128xf32>
    %44 = arith.negf %43 : vector<1x128xf32>
    %45 = math.exp %44 : vector<1x128xf32>
    %cst_14 = arith.constant 1.000000e+00 : f32
    %46 = vector.broadcast %cst_14 : f32 to vector<1x128xf32>
    %47 = arith.addf %46, %45 : vector<1x128xf32>
    %48 = arith.divf %46, %47 : vector<1x128xf32>
    %49 = vector.extract_strided_slice %30 {offsets = [0, 256], sizes = [1, 128], strides = [1, 1]} : vector<1x384xf32> to vector<1x128xf32>
    %50 = vector.extract_strided_slice %32 {offsets = [0, 256], sizes = [1, 128], strides = [1, 1]} : vector<1x384xf32> to vector<1x128xf32>
    %51 = arith.addf %50, %0 : vector<1x128xf32>
    %52 = arith.mulf %40, %51 : vector<1x128xf32>
    %53 = arith.addf %49, %52 : vector<1x128xf32>
    %54 = math.tanh %53 : vector<1x128xf32>
    %55 = arith.subf %29, %54 : vector<1x128xf32>
    %56 = arith.mulf %48, %55 : vector<1x128xf32>
    %57 = arith.addf %54, %56 : vector<1x128xf32>
    %c2 = arith.constant 2 : index
    %c0_15 = arith.constant 0 : index
    %58 = vector.load %arg1[%c2, %c0_15] : memref<8x384xf32, #tpu.memory_space<vmem>>, vector<1x384xf32>
    %c0_16 = arith.constant 0 : index
    %c0_17 = arith.constant 0 : index
    %59 = vector.load %arg2[%c0_16, %c0_17] : memref<128x384xf32, #tpu.memory_space<vmem>>, vector<128x384xf32>
    %cst_18 = arith.constant dense<0.000000e+00> : vector<1x384xf32>
    %60 = tpu.matmul %57, %59, %cst_18 {dimension_numbers = #tpu.dot_dimension_numbers<[1], [0], [0], [1], [0, 0, 1, 1], [], []>} : vector<1x128xf32>, vector<128x384xf32>, vector<1x384xf32> -> vector<1x384xf32>
    %61 = vector.extract_strided_slice %58 {offsets = [0, 0], sizes = [1, 128], strides = [1, 1]} : vector<1x384xf32> to vector<1x128xf32>
    %62 = vector.extract_strided_slice %60 {offsets = [0, 0], sizes = [1, 128], strides = [1, 1]} : vector<1x384xf32> to vector<1x128xf32>
    %63 = arith.addf %61, %62 : vector<1x128xf32>
    %64 = arith.negf %63 : vector<1x128xf32>
    %65 = math.exp %64 : vector<1x128xf32>
    %cst_19 = arith.constant 1.000000e+00 : f32
    %66 = vector.broadcast %cst_19 : f32 to vector<1x128xf32>
    %67 = arith.addf %66, %65 : vector<1x128xf32>
    %68 = arith.divf %66, %67 : vector<1x128xf32>
    %69 = vector.extract_strided_slice %58 {offsets = [0, 128], sizes = [1, 128], strides = [1, 1]} : vector<1x384xf32> to vector<1x128xf32>
    %70 = vector.extract_strided_slice %60 {offsets = [0, 128], sizes = [1, 128], strides = [1, 1]} : vector<1x384xf32> to vector<1x128xf32>
    %71 = arith.addf %69, %70 : vector<1x128xf32>
    %72 = arith.negf %71 : vector<1x128xf32>
    %73 = math.exp %72 : vector<1x128xf32>
    %cst_20 = arith.constant 1.000000e+00 : f32
    %74 = vector.broadcast %cst_20 : f32 to vector<1x128xf32>
    %75 = arith.addf %74, %73 : vector<1x128xf32>
    %76 = arith.divf %74, %75 : vector<1x128xf32>
    %77 = vector.extract_strided_slice %58 {offsets = [0, 256], sizes = [1, 128], strides = [1, 1]} : vector<1x384xf32> to vector<1x128xf32>
    %78 = vector.extract_strided_slice %60 {offsets = [0, 256], sizes = [1, 128], strides = [1, 1]} : vector<1x384xf32> to vector<1x128xf32>
    %79 = arith.addf %78, %0 : vector<1x128xf32>
    %80 = arith.mulf %68, %79 : vector<1x128xf32>
    %81 = arith.addf %77, %80 : vector<1x128xf32>
    %82 = math.tanh %81 : vector<1x128xf32>
    %83 = arith.subf %57, %82 : vector<1x128xf32>
    %84 = arith.mulf %76, %83 : vector<1x128xf32>
    %85 = arith.addf %82, %84 : vector<1x128xf32>
    %c3 = arith.constant 3 : index
    %c0_21 = arith.constant 0 : index
    %86 = vector.load %arg1[%c3, %c0_21] : memref<8x384xf32, #tpu.memory_space<vmem>>, vector<1x384xf32>
    %c0_22 = arith.constant 0 : index
    %c0_23 = arith.constant 0 : index
    %87 = vector.load %arg2[%c0_22, %c0_23] : memref<128x384xf32, #tpu.memory_space<vmem>>, vector<128x384xf32>
    %cst_24 = arith.constant dense<0.000000e+00> : vector<1x384xf32>
    %88 = tpu.matmul %85, %87, %cst_24 {dimension_numbers = #tpu.dot_dimension_numbers<[1], [0], [0], [1], [0, 0, 1, 1], [], []>} : vector<1x128xf32>, vector<128x384xf32>, vector<1x384xf32> -> vector<1x384xf32>
    %89 = vector.extract_strided_slice %86 {offsets = [0, 0], sizes = [1, 128], strides = [1, 1]} : vector<1x384xf32> to vector<1x128xf32>
    %90 = vector.extract_strided_slice %88 {offsets = [0, 0], sizes = [1, 128], strides = [1, 1]} : vector<1x384xf32> to vector<1x128xf32>
    %91 = arith.addf %89, %90 : vector<1x128xf32>
    %92 = arith.negf %91 : vector<1x128xf32>
    %93 = math.exp %92 : vector<1x128xf32>
    %cst_25 = arith.constant 1.000000e+00 : f32
    %94 = vector.broadcast %cst_25 : f32 to vector<1x128xf32>
    %95 = arith.addf %94, %93 : vector<1x128xf32>
    %96 = arith.divf %94, %95 : vector<1x128xf32>
    %97 = vector.extract_strided_slice %86 {offsets = [0, 128], sizes = [1, 128], strides = [1, 1]} : vector<1x384xf32> to vector<1x128xf32>
    %98 = vector.extract_strided_slice %88 {offsets = [0, 128], sizes = [1, 128], strides = [1, 1]} : vector<1x384xf32> to vector<1x128xf32>
    %99 = arith.addf %97, %98 : vector<1x128xf32>
    %100 = arith.negf %99 : vector<1x128xf32>
    %101 = math.exp %100 : vector<1x128xf32>
    %cst_26 = arith.constant 1.000000e+00 : f32
    %102 = vector.broadcast %cst_26 : f32 to vector<1x128xf32>
    %103 = arith.addf %102, %101 : vector<1x128xf32>
    %104 = arith.divf %102, %103 : vector<1x128xf32>
    %105 = vector.extract_strided_slice %86 {offsets = [0, 256], sizes = [1, 128], strides = [1, 1]} : vector<1x384xf32> to vector<1x128xf32>
    %106 = vector.extract_strided_slice %88 {offsets = [0, 256], sizes = [1, 128], strides = [1, 1]} : vector<1x384xf32> to vector<1x128xf32>
    %107 = arith.addf %106, %0 : vector<1x128xf32>
    %108 = arith.mulf %96, %107 : vector<1x128xf32>
    %109 = arith.addf %105, %108 : vector<1x128xf32>
    %110 = math.tanh %109 : vector<1x128xf32>
    %111 = arith.subf %85, %110 : vector<1x128xf32>
    %112 = arith.mulf %104, %111 : vector<1x128xf32>
    %113 = arith.addf %110, %112 : vector<1x128xf32>
    %c4 = arith.constant 4 : index
    %c0_27 = arith.constant 0 : index
    %114 = vector.load %arg1[%c4, %c0_27] : memref<8x384xf32, #tpu.memory_space<vmem>>, vector<1x384xf32>
    %c0_28 = arith.constant 0 : index
    %c0_29 = arith.constant 0 : index
    %115 = vector.load %arg2[%c0_28, %c0_29] : memref<128x384xf32, #tpu.memory_space<vmem>>, vector<128x384xf32>
    %cst_30 = arith.constant dense<0.000000e+00> : vector<1x384xf32>
    %116 = tpu.matmul %113, %115, %cst_30 {dimension_numbers = #tpu.dot_dimension_numbers<[1], [0], [0], [1], [0, 0, 1, 1], [], []>} : vector<1x128xf32>, vector<128x384xf32>, vector<1x384xf32> -> vector<1x384xf32>
    %117 = vector.extract_strided_slice %114 {offsets = [0, 0], sizes = [1, 128], strides = [1, 1]} : vector<1x384xf32> to vector<1x128xf32>
    %118 = vector.extract_strided_slice %116 {offsets = [0, 0], sizes = [1, 128], strides = [1, 1]} : vector<1x384xf32> to vector<1x128xf32>
    %119 = arith.addf %117, %118 : vector<1x128xf32>
    %120 = arith.negf %119 : vector<1x128xf32>
    %121 = math.exp %120 : vector<1x128xf32>
    %cst_31 = arith.constant 1.000000e+00 : f32
    %122 = vector.broadcast %cst_31 : f32 to vector<1x128xf32>
    %123 = arith.addf %122, %121 : vector<1x128xf32>
    %124 = arith.divf %122, %123 : vector<1x128xf32>
    %125 = vector.extract_strided_slice %114 {offsets = [0, 128], sizes = [1, 128], strides = [1, 1]} : vector<1x384xf32> to vector<1x128xf32>
    %126 = vector.extract_strided_slice %116 {offsets = [0, 128], sizes = [1, 128], strides = [1, 1]} : vector<1x384xf32> to vector<1x128xf32>
    %127 = arith.addf %125, %126 : vector<1x128xf32>
    %128 = arith.negf %127 : vector<1x128xf32>
    %129 = math.exp %128 : vector<1x128xf32>
    %cst_32 = arith.constant 1.000000e+00 : f32
    %130 = vector.broadcast %cst_32 : f32 to vector<1x128xf32>
    %131 = arith.addf %130, %129 : vector<1x128xf32>
    %132 = arith.divf %130, %131 : vector<1x128xf32>
    %133 = vector.extract_strided_slice %114 {offsets = [0, 256], sizes = [1, 128], strides = [1, 1]} : vector<1x384xf32> to vector<1x128xf32>
    %134 = vector.extract_strided_slice %116 {offsets = [0, 256], sizes = [1, 128], strides = [1, 1]} : vector<1x384xf32> to vector<1x128xf32>
    %135 = arith.addf %134, %0 : vector<1x128xf32>
    %136 = arith.mulf %124, %135 : vector<1x128xf32>
    %137 = arith.addf %133, %136 : vector<1x128xf32>
    %138 = math.tanh %137 : vector<1x128xf32>
    %139 = arith.subf %113, %138 : vector<1x128xf32>
    %140 = arith.mulf %132, %139 : vector<1x128xf32>
    %141 = arith.addf %138, %140 : vector<1x128xf32>
    %c5 = arith.constant 5 : index
    %c0_33 = arith.constant 0 : index
    %142 = vector.load %arg1[%c5, %c0_33] : memref<8x384xf32, #tpu.memory_space<vmem>>, vector<1x384xf32>
    %c0_34 = arith.constant 0 : index
    %c0_35 = arith.constant 0 : index
    %143 = vector.load %arg2[%c0_34, %c0_35] : memref<128x384xf32, #tpu.memory_space<vmem>>, vector<128x384xf32>
    %cst_36 = arith.constant dense<0.000000e+00> : vector<1x384xf32>
    %144 = tpu.matmul %141, %143, %cst_36 {dimension_numbers = #tpu.dot_dimension_numbers<[1], [0], [0], [1], [0, 0, 1, 1], [], []>} : vector<1x128xf32>, vector<128x384xf32>, vector<1x384xf32> -> vector<1x384xf32>
    %145 = vector.extract_strided_slice %142 {offsets = [0, 0], sizes = [1, 128], strides = [1, 1]} : vector<1x384xf32> to vector<1x128xf32>
    %146 = vector.extract_strided_slice %144 {offsets = [0, 0], sizes = [1, 128], strides = [1, 1]} : vector<1x384xf32> to vector<1x128xf32>
    %147 = arith.addf %145, %146 : vector<1x128xf32>
    %148 = arith.negf %147 : vector<1x128xf32>
    %149 = math.exp %148 : vector<1x128xf32>
    %cst_37 = arith.constant 1.000000e+00 : f32
    %150 = vector.broadcast %cst_37 : f32 to vector<1x128xf32>
    %151 = arith.addf %150, %149 : vector<1x128xf32>
    %152 = arith.divf %150, %151 : vector<1x128xf32>
    %153 = vector.extract_strided_slice %142 {offsets = [0, 128], sizes = [1, 128], strides = [1, 1]} : vector<1x384xf32> to vector<1x128xf32>
    %154 = vector.extract_strided_slice %144 {offsets = [0, 128], sizes = [1, 128], strides = [1, 1]} : vector<1x384xf32> to vector<1x128xf32>
    %155 = arith.addf %153, %154 : vector<1x128xf32>
    %156 = arith.negf %155 : vector<1x128xf32>
    %157 = math.exp %156 : vector<1x128xf32>
    %cst_38 = arith.constant 1.000000e+00 : f32
    %158 = vector.broadcast %cst_38 : f32 to vector<1x128xf32>
    %159 = arith.addf %158, %157 : vector<1x128xf32>
    %160 = arith.divf %158, %159 : vector<1x128xf32>
    %161 = vector.extract_strided_slice %142 {offsets = [0, 256], sizes = [1, 128], strides = [1, 1]} : vector<1x384xf32> to vector<1x128xf32>
    %162 = vector.extract_strided_slice %144 {offsets = [0, 256], sizes = [1, 128], strides = [1, 1]} : vector<1x384xf32> to vector<1x128xf32>
    %163 = arith.addf %162, %0 : vector<1x128xf32>
    %164 = arith.mulf %152, %163 : vector<1x128xf32>
    %165 = arith.addf %161, %164 : vector<1x128xf32>
    %166 = math.tanh %165 : vector<1x128xf32>
    %167 = arith.subf %141, %166 : vector<1x128xf32>
    %168 = arith.mulf %160, %167 : vector<1x128xf32>
    %169 = arith.addf %166, %168 : vector<1x128xf32>
    %c6 = arith.constant 6 : index
    %c0_39 = arith.constant 0 : index
    %170 = vector.load %arg1[%c6, %c0_39] : memref<8x384xf32, #tpu.memory_space<vmem>>, vector<1x384xf32>
    %c0_40 = arith.constant 0 : index
    %c0_41 = arith.constant 0 : index
    %171 = vector.load %arg2[%c0_40, %c0_41] : memref<128x384xf32, #tpu.memory_space<vmem>>, vector<128x384xf32>
    %cst_42 = arith.constant dense<0.000000e+00> : vector<1x384xf32>
    %172 = tpu.matmul %169, %171, %cst_42 {dimension_numbers = #tpu.dot_dimension_numbers<[1], [0], [0], [1], [0, 0, 1, 1], [], []>} : vector<1x128xf32>, vector<128x384xf32>, vector<1x384xf32> -> vector<1x384xf32>
    %173 = vector.extract_strided_slice %170 {offsets = [0, 0], sizes = [1, 128], strides = [1, 1]} : vector<1x384xf32> to vector<1x128xf32>
    %174 = vector.extract_strided_slice %172 {offsets = [0, 0], sizes = [1, 128], strides = [1, 1]} : vector<1x384xf32> to vector<1x128xf32>
    %175 = arith.addf %173, %174 : vector<1x128xf32>
    %176 = arith.negf %175 : vector<1x128xf32>
    %177 = math.exp %176 : vector<1x128xf32>
    %cst_43 = arith.constant 1.000000e+00 : f32
    %178 = vector.broadcast %cst_43 : f32 to vector<1x128xf32>
    %179 = arith.addf %178, %177 : vector<1x128xf32>
    %180 = arith.divf %178, %179 : vector<1x128xf32>
    %181 = vector.extract_strided_slice %170 {offsets = [0, 128], sizes = [1, 128], strides = [1, 1]} : vector<1x384xf32> to vector<1x128xf32>
    %182 = vector.extract_strided_slice %172 {offsets = [0, 128], sizes = [1, 128], strides = [1, 1]} : vector<1x384xf32> to vector<1x128xf32>
    %183 = arith.addf %181, %182 : vector<1x128xf32>
    %184 = arith.negf %183 : vector<1x128xf32>
    %185 = math.exp %184 : vector<1x128xf32>
    %cst_44 = arith.constant 1.000000e+00 : f32
    %186 = vector.broadcast %cst_44 : f32 to vector<1x128xf32>
    %187 = arith.addf %186, %185 : vector<1x128xf32>
    %188 = arith.divf %186, %187 : vector<1x128xf32>
    %189 = vector.extract_strided_slice %170 {offsets = [0, 256], sizes = [1, 128], strides = [1, 1]} : vector<1x384xf32> to vector<1x128xf32>
    %190 = vector.extract_strided_slice %172 {offsets = [0, 256], sizes = [1, 128], strides = [1, 1]} : vector<1x384xf32> to vector<1x128xf32>
    %191 = arith.addf %190, %0 : vector<1x128xf32>
    %192 = arith.mulf %180, %191 : vector<1x128xf32>
    %193 = arith.addf %189, %192 : vector<1x128xf32>
    %194 = math.tanh %193 : vector<1x128xf32>
    %195 = arith.subf %169, %194 : vector<1x128xf32>
    %196 = arith.mulf %188, %195 : vector<1x128xf32>
    %197 = arith.addf %194, %196 : vector<1x128xf32>
    %c7 = arith.constant 7 : index
    %c0_45 = arith.constant 0 : index
    %198 = vector.load %arg1[%c7, %c0_45] : memref<8x384xf32, #tpu.memory_space<vmem>>, vector<1x384xf32>
    %c0_46 = arith.constant 0 : index
    %c0_47 = arith.constant 0 : index
    %199 = vector.load %arg2[%c0_46, %c0_47] : memref<128x384xf32, #tpu.memory_space<vmem>>, vector<128x384xf32>
    %cst_48 = arith.constant dense<0.000000e+00> : vector<1x384xf32>
    %200 = tpu.matmul %197, %199, %cst_48 {dimension_numbers = #tpu.dot_dimension_numbers<[1], [0], [0], [1], [0, 0, 1, 1], [], []>} : vector<1x128xf32>, vector<128x384xf32>, vector<1x384xf32> -> vector<1x384xf32>
    %201 = vector.extract_strided_slice %198 {offsets = [0, 0], sizes = [1, 128], strides = [1, 1]} : vector<1x384xf32> to vector<1x128xf32>
    %202 = vector.extract_strided_slice %200 {offsets = [0, 0], sizes = [1, 128], strides = [1, 1]} : vector<1x384xf32> to vector<1x128xf32>
    %203 = arith.addf %201, %202 : vector<1x128xf32>
    %204 = arith.negf %203 : vector<1x128xf32>
    %205 = math.exp %204 : vector<1x128xf32>
    %cst_49 = arith.constant 1.000000e+00 : f32
    %206 = vector.broadcast %cst_49 : f32 to vector<1x128xf32>
    %207 = arith.addf %206, %205 : vector<1x128xf32>
    %208 = arith.divf %206, %207 : vector<1x128xf32>
    %209 = vector.extract_strided_slice %198 {offsets = [0, 128], sizes = [1, 128], strides = [1, 1]} : vector<1x384xf32> to vector<1x128xf32>
    %210 = vector.extract_strided_slice %200 {offsets = [0, 128], sizes = [1, 128], strides = [1, 1]} : vector<1x384xf32> to vector<1x128xf32>
    %211 = arith.addf %209, %210 : vector<1x128xf32>
    %212 = arith.negf %211 : vector<1x128xf32>
    %213 = math.exp %212 : vector<1x128xf32>
    %cst_50 = arith.constant 1.000000e+00 : f32
    %214 = vector.broadcast %cst_50 : f32 to vector<1x128xf32>
    %215 = arith.addf %214, %213 : vector<1x128xf32>
    %216 = arith.divf %214, %215 : vector<1x128xf32>
    %217 = vector.extract_strided_slice %198 {offsets = [0, 256], sizes = [1, 128], strides = [1, 1]} : vector<1x384xf32> to vector<1x128xf32>
    %218 = vector.extract_strided_slice %200 {offsets = [0, 256], sizes = [1, 128], strides = [1, 1]} : vector<1x384xf32> to vector<1x128xf32>
    %219 = arith.addf %218, %0 : vector<1x128xf32>
    %220 = arith.mulf %208, %219 : vector<1x128xf32>
    %221 = arith.addf %217, %220 : vector<1x128xf32>
    %222 = math.tanh %221 : vector<1x128xf32>
    %223 = arith.subf %197, %222 : vector<1x128xf32>
    %224 = arith.mulf %216, %223 : vector<1x128xf32>
    %225 = arith.addf %222, %224 : vector<1x128xf32>
    %226 = tpu.concatenate %29, %57, %85, %113, %141, %169, %197, %225 in 0 : vector<1x128xf32>, vector<1x128xf32>, vector<1x128xf32>, vector<1x128xf32>, vector<1x128xf32>, vector<1x128xf32>, vector<1x128xf32>, vector<1x128xf32> -> vector<8x128xf32>
    %c0_51 = arith.constant 0 : index
    %c0_52 = arith.constant 0 : index
    %227 = vector.load %arg5[%c0_51, %c0_52] : memref<8x128xf32, #tpu.memory_space<vmem>>, vector<8x128xf32>
    tpu.vector_store %arg5[%c0_51, %c0_52], %226 {strides = array<i32>} : memref<8x128xf32, #tpu.memory_space<vmem>>, vector<8x128xf32>,
    return
  }
  func.func @transform_0(%arg0: i32) -> (i32, i32) {
    %c0_i32 = arith.constant 0 : i32
    %c0_i32_0 = arith.constant 0 : i32
    %c0_i32_1 = arith.constant 0 : i32
    return %c0_i32, %c0_i32_0 : i32, i32
  }
  func.func @transform_1(%arg0: i32) -> (i32, i32) {
    %c0_i32 = arith.constant 0 : i32
    %c0_i32_0 = arith.constant 0 : i32
    %c0_i32_1 = arith.constant 0 : i32
    return %c0_i32, %c0_i32_0 : i32, i32
  }
  func.func @transform_2(%arg0: i32) -> (i32, i32) {
    %c0_i32 = arith.constant 0 : i32
    %c0_i32_0 = arith.constant 0 : i32
    %c0_i32_1 = arith.constant 0 : i32
    return %c0_i32, %c0_i32_0 : i32, i32
  }
  func.func @transform_3(%arg0: i32) -> (i32, i32) {
    %c0_i32 = arith.constant 0 : i32
    %c0_i32_0 = arith.constant 0 : i32
    %c0_i32_1 = arith.constant 0 : i32
    return %c0_i32, %c0_i32_0 : i32, i32
  }
  func.func @transform_4(%arg0: i32) -> (i32, i32) {
    %c0_i32 = arith.constant 0 : i32
    %c0_i32_0 = arith.constant 0 : i32
    %c0_i32_1 = arith.constant 0 : i32
    return %c0_i32, %c0_i32_0 : i32, i32
  }
}

</mosaic_0001>

<bundles_post_ra>
// kernel: _forward.1
= control target key start
LH: loop header
LB: loop body
LE: loop exit
PB: predicated region body
PF: predicated region fallthrough
CT: control target
= control target key end

     0   :  { %9 = vsyncpa [#allocation3], 0  ;;  %s1216_s18 = smov [#allocation2]   ;;  %s1217_s20 = smov 384   ;;  %s1826_s0 = inlined_call_operand.vmem [shape: f32[8,384], index: 0, kind: input, shape index: {}]   ;;  %s1827_s1 = inlined_call_operand.hbm [shape: f32[128,384], index: 1, kind: input, shape index: {}]   ;;  %s1828_s2 = inlined_call_operand.vmem [shape: f32[1,128], index: 2, kind: input, shape index: {}]   ;;  %s1829_s3 = inlined_call_operand.vmem [shape: f32[1,128], index: 3, kind: input, shape index: {}]   ;;  %s1830_s4 = inlined_call_operand.vmem [shape: f32[8,128], index: 4, kind: output, shape index: {}]  }
   0x1   :  { %s16_s17 = sshll.u32 %s1827_s1, 4  ;;  %s18_s19 = sshll.u32 %s1216_s18, 4  ;;  %s17_s17 = int_to_ptr.hbm [resolvable:$true] %s16_s17  ;;  %s19_s19 = int_to_ptr.vmem [resolvable:$true] %s18_s19 }
   0x2   :  { %s1218_s21 = smov 24  }
   0x3   :  { %24 = dma.hbm_to_vmem [thread:$0]  %s17_s17, 6144, %s19_s19, [#allocation3], %s1217_s20, %s1217_s20, %s1218_s21  }
   0x4   :  { %1214 = dma.done.wait [#allocation3], 6144  }
   0x5   :  { %1215 = vsyncadd [#allocation3], 4294961152  ;;  %v1247_v0 = vld [vmem:[#allocation2 + $0x168] sm:$0xff]  ;;  %v1249_v1 = vld [vmem:[#allocation2 + $0x170] sm:$0xff] }
   0x6   :  { %v1251_v2 = vld [vmem:[#allocation2 + $0x150] sm:$0xff]  ;;  %84 = vmatpush.msra.mxu0 %v1247_v0  ;;  %104 = vmatpush.msra.mxu1 %v1249_v1  ;;  %v1255_v3 = vld [vmem:[#allocation2 + $0x158] sm:$0xff]  ;;  %v1259_v5 = vld [vmem:[#allocation2 + $0x140] sm:$0xff] }
   0x7   :  { %v1257_v4 = vld [vmem:[#allocation2 + $0x138] sm:$0xff]  ;;  %198 = vmatpush.msra.mxu3 %v1247_v0  ;;  %v1264_v6 = vld [vmem:[#allocation2 + $0x120] sm:$0xff]  ;;  %v1266_v7 = vld [vmem:[#allocation2 + $0x128] sm:$0xff] }
   0x8   :  { %85 = vmatpush.msra.mxu0 %v1251_v2  ;;  %105 = vmatpush.msra.mxu1 %v1255_v3  ;;  %v1271_v8 = vld [vmem:[#allocation2 + $0x108] sm:$0xff]  ;;  %v1273_v9 = vld [vmem:[#allocation2 + $0x110] sm:$0xff]  ;;  %v1280_v11 = vld [vmem:[#allocation2 + $0xf8] sm:$0xff] }
   0x9   :  { %199 = vmatpush.msra.mxu3 %v1251_v2  ;;  %v1278_v10 = vld [vmem:[#allocation2 + $0xf0] sm:$0xff]  ;;  %v1282_v12 = vld [vmem:[#allocation2 + $0x178] sm:$0xff]  ;;  %v1287_v13 = vld [vmem:[#allocation2 + $0x160] sm:$0xff] }
   0xa   :  { %86 = vmatpush.msra.mxu0 %v1257_v4  ;;  %106 = vmatpush.msra.mxu1 %v1259_v5  ;;  %v1289_v14 = vld [vmem:[#allocation2 + $0xd8] sm:$0xff]  ;;  %v1291_v15 = vld [vmem:[#allocation2 + $0xe0] sm:$0xff]  ;;  %v1297_v16 = vld [vmem:[#allocation2 + $0x148] sm:$0xff] }
   0xb   :  { %200 = vmatpush.msra.mxu3 %v1257_v4  ;;  %124 = vmatpush.msra.mxu2 %v1282_v12  ;;  %v1299_v17 = vld [vmem:[#allocation2 + $0xc0] sm:$0xff]  ;;  %v1301_v18 = vld [vmem:[#allocation2 + $0xc8] sm:$0xff]  ;;  %v1307_v19 = vld [vmem:[#allocation2 + $0x130] sm:$0xff] }
   0xc   :  { %87 = vmatpush.msra.mxu0 %v1264_v6  ;;  %107 = vmatpush.msra.mxu1 %v1266_v7  ;;  %v1309_v20 = vld [vmem:[#allocation2 + $0xa8] sm:$0xff]  ;;  %v1311_v21 = vld [vmem:[#allocation2 + $0xb0] sm:$0xff]  ;;  %v1317_v22 = vld [vmem:[#allocation2 + $0x118] sm:$0xff] }
   0xd   :  { %201 = vmatpush.msra.mxu3 %v1264_v6  ;;  %125 = vmatpush.msra.mxu2 %v1287_v13  ;;  %v1319_v23 = vld [vmem:[#allocation2 + $0x90] sm:$0xff]  ;;  %v1321_v24 = vld [vmem:[#allocation2 + $0x98] sm:$0xff]  ;;  %v1327_v25 = vld [vmem:[#allocation2 + $0x100] sm:$0xff] }
   0xe   :  { %88 = vmatpush.msra.mxu0 %v1271_v8  ;;  %108 = vmatpush.msra.mxu1 %v1273_v9  ;;  %v1329_v26 = vld [vmem:[#allocation2 + $0x78] sm:$0xff]  ;;  %v1331_v27 = vld [vmem:[#allocation2 + $0x80] sm:$0xff]  ;;  %v1337_v28 = vld [vmem:[#allocation2 + $0xe8] sm:$0xff] }
   0xf   :  { %202 = vmatpush.msra.mxu3 %v1271_v8  ;;  %126 = vmatpush.msra.mxu2 %v1297_v16  ;;  %v1339_v29 = vld [vmem:[#allocation2 + $0x60] sm:$0xff]  ;;  %v1341_v30 = vld [vmem:[#allocation2 + $0x68] sm:$0xff]  ;;  %v1347_v31 = vld [vmem:[#allocation2 + $0xd0] sm:$0xff] }
  0x10   :  { %89 = vmatpush.msra.mxu0 %v1278_v10  ;;  %109 = vmatpush.msra.mxu1 %v1280_v11  ;;  %v1349_v32 = vld [vmem:[#allocation2 + $0x48] sm:$0xff]  ;;  %v1351_v33 = vld [vmem:[#allocation2 + $0x50] sm:$0xff]  ;;  %v1357_v34 = vld [vmem:[#allocation2 + $0xb8] sm:$0xff] }
  0x11   :  { %203 = vmatpush.msra.mxu3 %v1278_v10  ;;  %127 = vmatpush.msra.mxu2 %v1307_v19  ;;  %v1359_v35 = vld [vmem:[#allocation2 + $0x30] sm:$0xff]  ;;  %v1361_v36 = vld [vmem:[#allocation2 + $0x38] sm:$0xff]  ;;  %v1367_v37 = vld [vmem:[#allocation2 + $0xa0] sm:$0xff] }
  0x12   :  { %90 = vmatpush.msra.mxu0 %v1289_v14  ;;  %110 = vmatpush.msra.mxu1 %v1291_v15  ;;  %1850 = vst [vmem:[#allocation5_spill] sm:$0xff] %v1359_v35  ;;  %v1369_v38 = vld [vmem:[#allocation2 + $0x18] sm:$0xff]  ;;  %v1371_v39 = vld [vmem:[#allocation2 + $0x20] sm:$0xff]  ;;  %v1377_v40 = vld [vmem:[#allocation2 + $0x88] sm:$0xff] }
  0x13   :  { %204 = vmatpush.msra.mxu3 %v1289_v14  ;;  %128 = vmatpush.msra.mxu2 %v1317_v22  ;;  %1851 = vst [vmem:[#allocation6_spill] sm:$0xff] %v1361_v36  ;;  %v1379_v41 = vld [vmem:[#allocation2] sm:$0xff]  ;;  %v1381_v42 = vld [vmem:[#allocation2 + $0x8] sm:$0xff]  ;;  %v1393_v44 = vld [vmem:[#allocation2 + $0x70] sm:$0xff] }
  0x14   :  { %91 = vmatpush.msra.mxu0 %v1299_v17  ;;  %111 = vmatpush.msra.mxu1 %v1301_v18  ;;  %1852 = vst [vmem:[#allocation7_spill] sm:$0xff] %v1369_v38  ;;  %v1390_v43 = vld [vmem:[%s1829_s3] sm:$0x1]  ;;  %v1400_v45 = vld [vmem:[#allocation2 + $0x58] sm:$0xff]  ;;  %v1410_v47 = vld [vmem:[#allocation2 + $0x28] sm:$0xff] }
  0x15   :  { %205 = vmatpush.msra.mxu3 %v1299_v17  ;;  %129 = vmatpush.msra.mxu2 %v1327_v25  ;;  %1853 = vst [vmem:[#allocation8_spill] sm:$0xff] %v1371_v39  ;;  %v1404_v46 = vld [vmem:[#allocation2 + $0x40] sm:$0xff]  ;;  %v1416_v48 = vld [vmem:[#allocation2 + $0x10] sm:$0xff] }
  0x16   :  { %92 = vmatpush.msra.mxu0 %v1309_v20  ;;  %112 = vmatpush.msra.mxu1 %v1311_v21  ;;  %1854 = vst [vmem:[#allocation9_spill] sm:$0xff] %v1379_v41  ;;  %v35_v49 = vld [vmem:[%s1826_s0] ss:$8 sm:$0x7] }
  0x17   :  { %206 = vmatpush.msra.mxu3 %v1309_v20  ;;  %130 = vmatpush.msra.mxu2 %v1337_v28  ;;  %1855 = vst [vmem:[#allocation10_spill] sm:$0xff] %v1381_v42  ;;  %v165_v50 = vrot.slane %v35_v49, 1 }
  0x18   :  { %93 = vmatpush.msra.mxu0 %v1319_v23  ;;  %113 = vmatpush.msra.mxu1 %v1321_v24  ;;  %1856 = vst [vmem:[#allocation11_spill] sm:$0xff] %v1404_v46 }
  0x19   :  { %207 = vmatpush.msra.mxu3 %v1319_v23  ;;  %131 = vmatpush.msra.mxu2 %v1347_v31  ;;  %1857 = vst [vmem:[#allocation12_spill] sm:$0xff] %v1410_v47 }
  0x1a   :  { %94 = vmatpush.msra.mxu0 %v1329_v26  ;;  %114 = vmatpush.msra.mxu1 %v1331_v27  ;;  %1858 = vst [vmem:[#allocation13_spill] sm:$0xff] %v1416_v48 }
  0x1b   :  { %208 = vmatpush.msra.mxu3 %v1329_v26  ;;  %132 = vmatpush.msra.mxu2 %v1357_v34 }
  0x1c   :  { %95 = vmatpush.msra.mxu0 %v1339_v29  ;;  %115 = vmatpush.msra.mxu1 %v1341_v30 }
  0x1d   :  { %209 = vmatpush.msra.mxu3 %v1339_v29  ;;  %133 = vmatpush.msra.mxu2 %v1367_v37 }
  0x1e   :  { %96 = vmatpush.msra.mxu0 %v1349_v32  ;;  %116 = vmatpush.msra.mxu1 %v1351_v33 }
  0x1f   :  { %210 = vmatpush.msra.mxu3 %v1349_v32  ;;  %134 = vmatpush.msra.mxu2 %v1377_v40 }
  0x20   :  { %97 = vmatpush.msra.mxu0 %v1359_v35  ;;  %117 = vmatpush.msra.mxu1 %v1361_v36 }
  0x21   :  { %211 = vmatpush.msra.mxu3 %v1359_v35  ;;  %135 = vmatpush.msra.mxu2 %v1393_v44 }
  0x22   :  { %98 = vmatpush.msra.mxu0 %v1369_v38  ;;  %118 = vmatpush.msra.mxu1 %v1371_v39 }
  0x23   :  { %212 = vmatpush.msra.mxu3 %v1369_v38  ;;  %136 = vmatpush.msra.mxu2 %v1400_v45 }
  0x24   :  { %99 = vmatpush.msra.mxu0 %v1379_v41  ;;  %119 = vmatpush.msra.mxu1 %v1381_v42 }
  0x25   :  { %100 = vmatmul.f32.vlgmr.msra.gmra.mxu0 %v1390_v43  ;;  %120 = vmatmul.f32.vlgmr.msra.gmra.mxu1 %v1390_v43 }
  0x26   :  { %218 = vmatpush.msrb.mxu0 %v1249_v1  ;;  %238 = vmatpush.msrb.mxu1 %v1282_v12 }
  0x27   :  { %213 = vmatpush.msra.mxu3 %v1379_v41  ;;  %137 = vmatpush.msra.mxu2 %v1404_v46 }
  0x28   :  { %219 = vmatpush.msrb.mxu0 %v1255_v3  ;;  %239 = vmatpush.msrb.mxu1 %v1287_v13 }
  0x29   :  { %332 = vmatpush.msrb.mxu3 %v1249_v1  ;;  %138 = vmatpush.msra.mxu2 %v1410_v47 }
  0x2a   :  { %220 = vmatpush.msrb.mxu0 %v1259_v5  ;;  %240 = vmatpush.msrb.mxu1 %v1297_v16 }
  0x2b   :  { %333 = vmatpush.msrb.mxu3 %v1255_v3  ;;  %139 = vmatpush.msra.mxu2 %v1416_v48 }
  0x2c   :  { %221 = vmatpush.msrb.mxu0 %v1266_v7  ;;  %241 = vmatpush.msrb.mxu1 %v1307_v19 }
  0x2d   :  { %334 = vmatpush.msrb.mxu3 %v1259_v5  ;;  %140 = vmatmul.f32.vlgmr.msra.gmra.mxu2 %v1390_v43 }
  0x2e   :  { %222 = vmatpush.msrb.mxu0 %v1273_v9  ;;  %242 = vmatpush.msrb.mxu1 %v1317_v22 }
  0x2f   :  { %312 = vmatpush.msrb.mxu2 %v1247_v0  ;;  %335 = vmatpush.msrb.mxu3 %v1266_v7 }
  0x30   :  { %223 = vmatpush.msrb.mxu0 %v1280_v11  ;;  %243 = vmatpush.msrb.mxu1 %v1327_v25 }
  0x31   :  { %313 = vmatpush.msrb.mxu2 %v1251_v2  ;;  %336 = vmatpush.msrb.mxu3 %v1273_v9 }
  0x32   :  { %224 = vmatpush.msrb.mxu0 %v1291_v15  ;;  %244 = vmatpush.msrb.mxu1 %v1337_v28 }
  0x33   :  { %314 = vmatpush.msrb.mxu2 %v1257_v4  ;;  %337 = vmatpush.msrb.mxu3 %v1280_v11 }
  0x34   :  { %225 = vmatpush.msrb.mxu0 %v1301_v18  ;;  %245 = vmatpush.msrb.mxu1 %v1347_v31 }
  0x35   :  { %315 = vmatpush.msrb.mxu2 %v1264_v6  ;;  %338 = vmatpush.msrb.mxu3 %v1291_v15 }
  0x36   :  { %226 = vmatpush.msrb.mxu0 %v1311_v21  ;;  %246 = vmatpush.msrb.mxu1 %v1357_v34 }
  0x37   :  { %316 = vmatpush.msrb.mxu2 %v1271_v8  ;;  %339 = vmatpush.msrb.mxu3 %v1301_v18 }
  0x38   :  { %227 = vmatpush.msrb.mxu0 %v1321_v24  ;;  %247 = vmatpush.msrb.mxu1 %v1367_v37 }
  0x39   :  { %317 = vmatpush.msrb.mxu2 %v1278_v10  ;;  %340 = vmatpush.msrb.mxu3 %v1311_v21 }
  0x3a   :  { %228 = vmatpush.msrb.mxu0 %v1331_v27  ;;  %248 = vmatpush.msrb.mxu1 %v1377_v40 }
  0x3b   :  { %318 = vmatpush.msrb.mxu2 %v1289_v14  ;;  %341 = vmatpush.msrb.mxu3 %v1321_v24 }
  0x3c   :  { %229 = vmatpush.msrb.mxu0 %v1341_v30  ;;  %249 = vmatpush.msrb.mxu1 %v1393_v44 }
  0x3d   :  { %319 = vmatpush.msrb.mxu2 %v1299_v17  ;;  %342 = vmatpush.msrb.mxu3 %v1331_v27 }
  0x3e   :  { %230 = vmatpush.msrb.mxu0 %v1351_v33  ;;  %250 = vmatpush.msrb.mxu1 %v1400_v45 }
  0x3f   :  { %320 = vmatpush.msrb.mxu2 %v1309_v20  ;;  %343 = vmatpush.msrb.mxu3 %v1341_v30 }
  0x40   :  { %231 = vmatpush.msrb.mxu0 %v1361_v36  ;;  %251 = vmatpush.msrb.mxu1 %v1404_v46 }
  0x41   :  { %321 = vmatpush.msrb.mxu2 %v1319_v23  ;;  %344 = vmatpush.msrb.mxu3 %v1351_v33 }
  0x42   :  { %232 = vmatpush.msrb.mxu0 %v1371_v39  ;;  %252 = vmatpush.msrb.mxu1 %v1410_v47 }
  0x43   :  { %322 = vmatpush.msrb.mxu2 %v1329_v26  ;;  %345 = vmatpush.msrb.mxu3 %v1361_v36 }
  0x44   :  { %233 = vmatpush.msrb.mxu0 %v1381_v42  ;;  %253 = vmatpush.msrb.mxu1 %v1416_v48 }
  0x45   :  { %323 = vmatpush.msrb.mxu2 %v1339_v29  ;;  %346 = vmatpush.msrb.mxu3 %v1371_v39 }
  0x46   :  { %352 = vmatpush.msra.mxu0 %v1282_v12  ;;  %426 = vmatpush.msra.mxu1 %v1247_v0 }
  0x47   :  { %324 = vmatpush.msrb.mxu2 %v1349_v32  ;;  %347 = vmatpush.msrb.mxu3 %v1381_v42 }
  0x48   :  { %353 = vmatpush.msra.mxu0 %v1287_v13  ;;  %427 = vmatpush.msra.mxu1 %v1251_v2 }
  0x49   :  { %325 = vmatpush.msrb.mxu2 %v1359_v35 }
  0x4a   :  { %354 = vmatpush.msra.mxu0 %v1297_v16  ;;  %428 = vmatpush.msra.mxu1 %v1257_v4 }
  0x4b   :  { %326 = vmatpush.msrb.mxu2 %v1369_v38 }
  0x4c   :  { %355 = vmatpush.msra.mxu0 %v1307_v19  ;;  %429 = vmatpush.msra.mxu1 %v1264_v6 }
  0x4d   :  { %327 = vmatpush.msrb.mxu2 %v1379_v41 }
  0x4e   :  { %356 = vmatpush.msra.mxu0 %v1317_v22  ;;  %430 = vmatpush.msra.mxu1 %v1271_v8 }
  0x4f   :  { %446 = vmatpush.msra.mxu2 %v1249_v1 }
  0x50   :  { %357 = vmatpush.msra.mxu0 %v1327_v25  ;;  %431 = vmatpush.msra.mxu1 %v1278_v10 }
  0x51   :  { %447 = vmatpush.msra.mxu2 %v1255_v3 }
  0x52   :  { %358 = vmatpush.msra.mxu0 %v1337_v28  ;;  %432 = vmatpush.msra.mxu1 %v1289_v14 }
  0x53   :  { %448 = vmatpush.msra.mxu2 %v1259_v5 }
  0x54   :  { %359 = vmatpush.msra.mxu0 %v1347_v31  ;;  %433 = vmatpush.msra.mxu1 %v1299_v17 }
  0x55   :  { %449 = vmatpush.msra.mxu2 %v1266_v7 }
  0x56   :  { %360 = vmatpush.msra.mxu0 %v1357_v34  ;;  %434 = vmatpush.msra.mxu1 %v1309_v20 }
  0x57   :  { %450 = vmatpush.msra.mxu2 %v1273_v9 }
  0x58   :  { %361 = vmatpush.msra.mxu0 %v1367_v37  ;;  %435 = vmatpush.msra.mxu1 %v1319_v23 }
  0x59   :  { %451 = vmatpush.msra.mxu2 %v1280_v11 }
  0x5a   :  { %362 = vmatpush.msra.mxu0 %v1377_v40  ;;  %436 = vmatpush.msra.mxu1 %v1329_v26 }
  0x5b   :  { %452 = vmatpush.msra.mxu2 %v1291_v15 }
  0x5c   :  { %363 = vmatpush.msra.mxu0 %v1393_v44  ;;  %437 = vmatpush.msra.mxu1 %v1339_v29 }
  0x5d   :  { %453 = vmatpush.msra.mxu2 %v1301_v18 }
  0x5e   :  { %364 = vmatpush.msra.mxu0 %v1400_v45  ;;  %438 = vmatpush.msra.mxu1 %v1349_v32 }
  0x5f   :  { %454 = vmatpush.msra.mxu2 %v1311_v21 }
  0x60   :  { %365 = vmatpush.msra.mxu0 %v1404_v46  ;;  %439 = vmatpush.msra.mxu1 %v1359_v35 }
  0x61   :  { %455 = vmatpush.msra.mxu2 %v1321_v24 }
  0x62   :  { %366 = vmatpush.msra.mxu0 %v1410_v47  ;;  %440 = vmatpush.msra.mxu1 %v1369_v38 }
  0x63   :  { %456 = vmatpush.msra.mxu2 %v1331_v27 }
  0x64   :  { %367 = vmatpush.msra.mxu0 %v1416_v48  ;;  %441 = vmatpush.msra.mxu1 %v1379_v41  ;;  %v189_v48 = vrot.slane %v35_v49, 2 }
  0x65   :  { %457 = vmatpush.msra.mxu2 %v1341_v30 }
  0x67   :  { %458 = vmatpush.msra.mxu2 %v1351_v33 }
  0x69   :  { %459 = vmatpush.msra.mxu2 %v1361_v36 }
  0x6b   :  { %460 = vmatpush.msra.mxu2 %v1371_v39 }
  0x6d   :  { %461 = vmatpush.msra.mxu2 %v1381_v42 }
  0xa2   :  { %v101_v51 = vpop.f32.mrf.mxu0  ;;  %v121_v52 = vpop.f32.mrf.mxu1 }
  0xa3   :  { %v144_v53 = vadd.f32 %v101_v51, %v35_v49  ;;  %v167_v54 = vadd.f32 %v165_v50, %v121_v52  ;;  %v1533_v51 = vld [vmem:[%s1828_s2] sm:$0x1] }
  0xa5   :  { %v1035_v55 = vmul.f32 -1.442695, %v144_v53  ;;  %v1036_v56 = vmul.f32 -1.442695, %v167_v54 }
  0xa7   :  { %1061 = vpow2.f32 %v1035_v55 }
  0xa8   :  { %1063 = vpow2.f32 %v1036_v56 }
  0xad   :  { %v1062_v57 = vpop.eup %1061 }
  0xae   :  { %v1064_v58 = vpop.eup %1063  ;;  %v148_v59 = vadd.f32 1.0, %v1062_v57 }
  0xaf   :  { %v171_v60 = vadd.f32 1.0, %v1064_v58 }
  0xb0   :  { %1065 = vrcp.f32 %v148_v59  ;;  %v141_v50 = vpop.f32.mrf.mxu2  ;;  %v160_v52 = vand.u32 2147483648, %v148_v59  ;;  %v158_v54 = vand.u32 2147483647, %v148_v59  ;;  %vm154_vm1 = vweird.f32 %v148_v59 }
  0xb1   :  { %1067 = vrcp.f32 %v171_v60  ;;  %v187_v56 = vadd.f32 %v141_v50, %v1533_v51  ;;  %vm177_vm4 = vweird.f32 %v171_v60  ;;  %v183_v35 = vand.u32 2147483648, %v171_v60 }
  0xb2   :  { %v161_v58 = vor.u32 1.1754944e-38, %v160_v52  ;;  %vm159_vm3 = vcmp.eq.f32.partialorder %v158_v54, 8.507059e+37  ;;  %v181_v46 = vand.u32 2147483647, %v171_v60 }
  0xb4   :  { %vm182_vm7 = vcmp.eq.f32.partialorder %v181_v46, 8.507059e+37  ;;  %v1865_v46 = vld [vmem:[#allocation8_spill] sm:$0xff] }
  0xb6   :  { %v1066_v61 = vpop.eup %1065 }
  0xb7   :  { %v1068_v62 = vpop.eup %1067  ;;  %v150_v63 = vmul.f32 %v1066_v61, %v148_v59  ;;  %vm155_vm0 = vweird.f32 %v1066_v61  ;;  %v184_v59 = vor.u32 1.1754944e-38, %v183_v35  ;;  %v1860_v35 = vld [vmem:[#allocation11_spill] sm:$0xff] }
  0xb8   :  { %v173_v41 = vmul.f32 %v1068_v62, %v171_v60  ;;  %vm156_vm2 = vmor %vm154_vm1, %vm155_vm0  ;;  %vm178_vm5 = vweird.f32 %v1068_v62  ;;  %v1868_v60 = vld [vmem:[#allocation10_spill] sm:$0xff] }
  0xb9   :  { %v151_v42 = vsub.f32 1.0, %v150_v63  ;;  %vm179_vm6 = vmor %vm177_vm4, %vm178_vm5 }
  0xba   :  { %v174_v57 = vsub.f32 1.0, %v173_v41 }
  0xbb   :  { %v152_v53 = vmul.f32 %v1066_v61, %v151_v42 }
  0xbc   :  { %v175_v47 = vmul.f32 %v1068_v62, %v174_v57 }
  0xbd   :  { %v153_v55 = vadd.f32 %v1066_v61, %v152_v53 }
  0xbe   :  { %v176_v42 = vadd.f32 %v1068_v62, %v175_v47  ;;  %v1866_v47 = vld [vmem:[#allocation13_spill] sm:$0xff] }
  0xbf   :  { %v157_v63 = vsel %vm156_vm2, %v1066_v61, %v153_v55 }
  0xc0   :  { %v162_v39 = vsel %vm159_vm3, %v161_v58, %v157_v63  ;;  %v180_v50 = vsel %vm179_vm6, %v1068_v62, %v176_v42  ;;  %v1037_v62 = vld [vmem:[%s1826_s0 + $0x1] ss:$8 sm:$0x7] }
  0xc1   :  { %v188_v38 = vmul.f32 %v187_v56, %v162_v39  ;;  %v185_v49 = vsel %vm182_vm7, %v184_v59, %v180_v50  ;;  %v1863_v39 = vld [vmem:[#allocation12_spill] sm:$0xff]  ;;  %v279_v54 = vrot.slane %v1037_v62, 1 }
  0xc3   :  { %v191_v36 = vadd.f32 %v189_v48, %v188_v38  ;;  %v1862_v38 = vld [vmem:[#allocation6_spill] sm:$0xff]  ;;  %v1867_v48 = vld [vmem:[#allocation9_spill] sm:$0xff] }
  0xc5   :  { %1069 = vtanh.f32 %v191_v36  ;;  %v1861_v36 = vld [vmem:[#allocation5_spill] sm:$0xff] }
  0xcb   :  { %v1070_v41 = vpop.eup %1069 }
  0xcc   :  { %v193_v52 = vsub.f32 %v1390_v43, %v1070_v41  ;;  %v1864_v43 = vld [vmem:[#allocation7_spill] sm:$0xff] }
  0xce   :  { %v194_v61 = vmul.f32 %v193_v52, %v185_v49 }
  0xd0   :  { %v1537_v53 = vadd.f32 %v1070_v41, %v194_v61 }
  0xd2   :  { %1859 = vst [vmem:[#allocation14_spill] sm:$0xff] %v1537_v53  ;;  %214 = vmatmul.f32.vlgmr.msra.gmra.mxu3 %v1537_v53  ;;  %234 = vmatmul.f32.vlgmr.msrb.gmra.mxu0 %v1537_v53 }
  0xd3   :  { %254 = vmatmul.f32.vlgmr.msrb.gmra.mxu1 %v1537_v53  ;;  %466 = vmatpush.msra.mxu3 %v1282_v12 }
  0xd4   :  { %540 = vmatpush.msrb.mxu0 %v1247_v0  ;;  %560 = vmatpush.msrb.mxu1 %v1249_v1 }
  0xd5   :  { %467 = vmatpush.msra.mxu3 %v1287_v13 }
  0xd6   :  { %541 = vmatpush.msrb.mxu0 %v1251_v2  ;;  %561 = vmatpush.msrb.mxu1 %v1255_v3 }
  0xd7   :  { %468 = vmatpush.msra.mxu3 %v1297_v16 }
  0xd8   :  { %542 = vmatpush.msrb.mxu0 %v1257_v4  ;;  %562 = vmatpush.msrb.mxu1 %v1259_v5 }
  0xd9   :  { %469 = vmatpush.msra.mxu3 %v1307_v19 }
  0xda   :  { %543 = vmatpush.msrb.mxu0 %v1264_v6  ;;  %563 = vmatpush.msrb.mxu1 %v1266_v7 }
  0xdb   :  { %470 = vmatpush.msra.mxu3 %v1317_v22 }
  0xdc   :  { %544 = vmatpush.msrb.mxu0 %v1271_v8  ;;  %564 = vmatpush.msrb.mxu1 %v1273_v9 }
  0xdd   :  { %471 = vmatpush.msra.mxu3 %v1327_v25 }
  0xde   :  { %545 = vmatpush.msrb.mxu0 %v1278_v10  ;;  %565 = vmatpush.msrb.mxu1 %v1280_v11 }
  0xdf   :  { %472 = vmatpush.msra.mxu3 %v1337_v28 }
  0xe0   :  { %546 = vmatpush.msrb.mxu0 %v1289_v14  ;;  %566 = vmatpush.msrb.mxu1 %v1291_v15 }
  0xe1   :  { %473 = vmatpush.msra.mxu3 %v1347_v31 }
  0xe2   :  { %547 = vmatpush.msrb.mxu0 %v1299_v17  ;;  %567 = vmatpush.msrb.mxu1 %v1301_v18 }
  0xe3   :  { %474 = vmatpush.msra.mxu3 %v1357_v34 }
  0xe4   :  { %548 = vmatpush.msrb.mxu0 %v1309_v20  ;;  %568 = vmatpush.msrb.mxu1 %v1311_v21 }
  0xe5   :  { %475 = vmatpush.msra.mxu3 %v1367_v37 }
  0xe6   :  { %549 = vmatpush.msrb.mxu0 %v1319_v23  ;;  %569 = vmatpush.msrb.mxu1 %v1321_v24 }
  0xe7   :  { %476 = vmatpush.msra.mxu3 %v1377_v40 }
  0xe8   :  { %550 = vmatpush.msrb.mxu0 %v1329_v26  ;;  %570 = vmatpush.msrb.mxu1 %v1331_v27 }
  0xe9   :  { %477 = vmatpush.msra.mxu3 %v1393_v44 }
  0xea   :  { %551 = vmatpush.msrb.mxu0 %v1339_v29  ;;  %571 = vmatpush.msrb.mxu1 %v1341_v30 }
  0xeb   :  { %478 = vmatpush.msra.mxu3 %v1400_v45 }
  0xec   :  { %552 = vmatpush.msrb.mxu0 %v1349_v32  ;;  %572 = vmatpush.msrb.mxu1 %v1351_v33 }
  0xed   :  { %479 = vmatpush.msra.mxu3 %v1860_v35 }
  0xee   :  { %553 = vmatpush.msrb.mxu0 %v1861_v36  ;;  %573 = vmatpush.msrb.mxu1 %v1862_v38 }
  0xef   :  { %480 = vmatpush.msra.mxu3 %v1863_v39 }
  0xf0   :  { %554 = vmatpush.msrb.mxu0 %v1864_v43  ;;  %574 = vmatpush.msrb.mxu1 %v1865_v46 }
  0xf1   :  { %481 = vmatpush.msra.mxu3 %v1866_v47 }
  0xf2   :  { %555 = vmatpush.msrb.mxu0 %v1867_v48  ;;  %575 = vmatpush.msrb.mxu1 %v1868_v60 }
 0x14f   :  { %v235_v55 = vpop.f32.mrf.mxu0 }
 0x150   :  { %v281_v56 = vadd.f32 %v279_v54, %v235_v55  ;;  %v255_v55 = vpop.f32.mrf.mxu1 }
 0x152   :  { %v1039_v57 = vmul.f32 -1.442695, %v281_v56 }
 0x154   :  { %1071 = vpow2.f32 %v1039_v57 }
 0x155   :  { %v215_v58 = vpop.f32.mrf.mxu3 }
 0x156   :  { %v258_v63 = vadd.f32 %v1037_v62, %v215_v58 }
 0x158   :  { %v1038_v42 = vmul.f32 -1.442695, %v258_v63  ;;  %v303_v63 = vrot.slane %v1037_v62, 2 }
 0x15a   :  { %1073 = vpow2.f32 %v1038_v42  ;;  %v1072_v59 = vpop.eup %1071  ;;  %v301_v42 = vadd.f32 %v255_v55, %v1533_v51  ;;  %v1875_v55 = vld [vmem:[#allocation13_spill] sm:$0xff] }
 0x15b   :  { %v285_v41 = vadd.f32 1.0, %v1072_v59 }
 0x15d   :  { %vm291_vm13 = vweird.f32 %v285_v41  ;;  %v295_v35 = vand.u32 2147483647, %v285_v41 }
 0x15f   :  { %vm296_vm15 = vcmp.eq.f32.partialorder %v295_v35, 8.507059e+37  ;;  %v1869_v35 = vld [vmem:[#allocation11_spill] sm:$0xff] }
 0x160   :  { %v1074_v50 = vpop.eup %1073 }
 0x161   :  { %v262_v52 = vadd.f32 1.0, %v1074_v50 }
 0x163   :  { %1075 = vrcp.f32 %v262_v52  ;;  %v274_v46 = vand.u32 2147483648, %v262_v52  ;;  %v272_v54 = vand.u32 2147483647, %v262_v52  ;;  %vm268_vm9 = vweird.f32 %v262_v52 }
 0x164   :  { %1077 = vrcp.f32 %v285_v41 }
 0x165   :  { %v275_v58 = vor.u32 1.1754944e-38, %v274_v46  ;;  %vm273_vm11 = vcmp.eq.f32.partialorder %v272_v54, 8.507059e+37 }
 0x169   :  { %v1076_v49 = vpop.eup %1075 }
 0x16a   :  { %v1078_v61 = vpop.eup %1077  ;;  %v264_v60 = vmul.f32 %v1076_v49, %v262_v52  ;;  %vm269_vm8 = vweird.f32 %v1076_v49 }
 0x16b   :  { %v287_v47 = vmul.f32 %v1078_v61, %v285_v41  ;;  %vm270_vm10 = vmor %vm268_vm9, %vm269_vm8  ;;  %vm292_vm12 = vweird.f32 %v1078_v61 }
 0x16c   :  { %v265_v48 = vsub.f32 1.0, %v264_v60  ;;  %vm293_vm14 = vmor %vm291_vm13, %vm292_vm12 }
 0x16d   :  { %v288_v57 = vsub.f32 1.0, %v287_v47 }
 0x16e   :  { %v266_v43 = vmul.f32 %v1076_v49, %v265_v48  ;;  %v297_v48 = vand.u32 2147483648, %v285_v41  ;;  %v1873_v41 = vld [vmem:[#allocation7_spill] sm:$0xff] }
 0x16f   :  { %v289_v38 = vmul.f32 %v1078_v61, %v288_v57  ;;  %v1877_v57 = vld [vmem:[#allocation10_spill] sm:$0xff] }
 0x170   :  { %v267_v56 = vadd.f32 %v1076_v49, %v266_v43  ;;  %v298_v52 = vor.u32 1.1754944e-38, %v297_v48 }
 0x171   :  { %v290_v36 = vadd.f32 %v1078_v61, %v289_v38  ;;  %v1871_v38 = vld [vmem:[#allocation6_spill] sm:$0xff] }
 0x172   :  { %v271_v59 = vsel %vm270_vm10, %v1076_v49, %v267_v56  ;;  %v1876_v56 = vld [vmem:[#allocation9_spill] sm:$0xff] }
 0x173   :  { %v276_v50 = vsel %vm273_vm11, %v275_v58, %v271_v59  ;;  %v294_v43 = vsel %vm293_vm14, %v1078_v61, %v290_v36  ;;  %v1870_v36 = vld [vmem:[#allocation5_spill] sm:$0xff]  ;;  %v1874_v61 = vld [vmem:[#allocation8_spill] sm:$0xff] }
 0x174   :  { %v302_v39 = vmul.f32 %v301_v42, %v276_v50  ;;  %v299_v62 = vsel %vm296_vm15, %v298_v52, %v294_v43  ;;  %v1040_v58 = vld [vmem:[%s1826_s0 + $0x2] ss:$8 sm:$0x7] }
 0x176   :  { %v305_v60 = vadd.f32 %v303_v63, %v302_v39  ;;  %v1872_v39 = vld [vmem:[#allocation12_spill] sm:$0xff]  ;;  %v393_v63 = vrot.slane %v1040_v58, 1 }
 0x178   :  { %1079 = vtanh.f32 %v305_v60 }
 0x17e   :  { %v1080_v47 = vpop.eup %1079 }
 0x17f   :  { %v307_v46 = vsub.f32 %v1537_v53, %v1080_v47 }
 0x181   :  { %v308_v49 = vmul.f32 %v307_v46, %v299_v62 }
 0x183   :  { %v1595_v54 = vadd.f32 %v1080_v47, %v308_v49 }
 0x185   :  { %328 = vmatmul.f32.vlgmr.msrb.gmra.mxu2 %v1595_v54  ;;  %348 = vmatmul.f32.vlgmr.msrb.gmra.mxu3 %v1595_v54 }
 0x186   :  { %368 = vmatmul.f32.vlgmr.msra.gmra.mxu0 %v1595_v54  ;;  %580 = vmatpush.msrb.mxu2 %v1282_v12 }
 0x187   :  { %654 = vmatpush.msrb.mxu3 %v1247_v0  ;;  %674 = vmatpush.msra.mxu0 %v1249_v1 }
 0x188   :  { %581 = vmatpush.msrb.mxu2 %v1287_v13 }
 0x189   :  { %655 = vmatpush.msrb.mxu3 %v1251_v2  ;;  %675 = vmatpush.msra.mxu0 %v1255_v3 }
 0x18a   :  { %582 = vmatpush.msrb.mxu2 %v1297_v16 }
 0x18b   :  { %656 = vmatpush.msrb.mxu3 %v1257_v4  ;;  %676 = vmatpush.msra.mxu0 %v1259_v5 }
 0x18c   :  { %583 = vmatpush.msrb.mxu2 %v1307_v19 }
 0x18d   :  { %657 = vmatpush.msrb.mxu3 %v1264_v6  ;;  %677 = vmatpush.msra.mxu0 %v1266_v7 }
 0x18e   :  { %584 = vmatpush.msrb.mxu2 %v1317_v22 }
 0x18f   :  { %658 = vmatpush.msrb.mxu3 %v1271_v8  ;;  %678 = vmatpush.msra.mxu0 %v1273_v9 }
 0x190   :  { %585 = vmatpush.msrb.mxu2 %v1327_v25 }
 0x191   :  { %659 = vmatpush.msrb.mxu3 %v1278_v10  ;;  %679 = vmatpush.msra.mxu0 %v1280_v11 }
 0x192   :  { %586 = vmatpush.msrb.mxu2 %v1337_v28 }
 0x193   :  { %660 = vmatpush.msrb.mxu3 %v1289_v14  ;;  %680 = vmatpush.msra.mxu0 %v1291_v15 }
 0x194   :  { %587 = vmatpush.msrb.mxu2 %v1347_v31 }
 0x195   :  { %661 = vmatpush.msrb.mxu3 %v1299_v17  ;;  %681 = vmatpush.msra.mxu0 %v1301_v18 }
 0x196   :  { %588 = vmatpush.msrb.mxu2 %v1357_v34 }
 0x197   :  { %662 = vmatpush.msrb.mxu3 %v1309_v20  ;;  %682 = vmatpush.msra.mxu0 %v1311_v21 }
 0x198   :  { %589 = vmatpush.msrb.mxu2 %v1367_v37 }
 0x199   :  { %663 = vmatpush.msrb.mxu3 %v1319_v23  ;;  %683 = vmatpush.msra.mxu0 %v1321_v24 }
 0x19a   :  { %590 = vmatpush.msrb.mxu2 %v1377_v40 }
 0x19b   :  { %664 = vmatpush.msrb.mxu3 %v1329_v26  ;;  %684 = vmatpush.msra.mxu0 %v1331_v27 }
 0x19c   :  { %591 = vmatpush.msrb.mxu2 %v1393_v44 }
 0x19d   :  { %665 = vmatpush.msrb.mxu3 %v1339_v29  ;;  %685 = vmatpush.msra.mxu0 %v1341_v30 }
 0x19e   :  { %592 = vmatpush.msrb.mxu2 %v1400_v45 }
 0x19f   :  { %666 = vmatpush.msrb.mxu3 %v1349_v32  ;;  %686 = vmatpush.msra.mxu0 %v1351_v33 }
 0x1a0   :  { %593 = vmatpush.msrb.mxu2 %v1869_v35 }
 0x1a1   :  { %667 = vmatpush.msrb.mxu3 %v1870_v36  ;;  %687 = vmatpush.msra.mxu0 %v1871_v38 }
 0x1a2   :  { %594 = vmatpush.msrb.mxu2 %v1872_v39 }
 0x1a3   :  { %668 = vmatpush.msrb.mxu3 %v1873_v41  ;;  %688 = vmatpush.msra.mxu0 %v1874_v61 }
 0x1a4   :  { %595 = vmatpush.msrb.mxu2 %v1875_v55 }
 0x1a5   :  { %669 = vmatpush.msrb.mxu3 %v1876_v56  ;;  %689 = vmatpush.msra.mxu0 %v1877_v57 }
 0x208   :  { %v329_v42 = vpop.f32.mrf.mxu2  ;;  %v349_v59 = vpop.f32.mrf.mxu3 }
 0x209   :  { %v372_v50 = vadd.f32 %v1040_v58, %v329_v42  ;;  %v395_v60 = vadd.f32 %v393_v63, %v349_v59  ;;  %v369_v63 = vpop.f32.mrf.mxu0 }
 0x20b   :  { %v1041_v48 = vmul.f32 -1.442695, %v372_v50  ;;  %v1042_v43 = vmul.f32 -1.442695, %v395_v60 }
 0x20d   :  { %1081 = vpow2.f32 %v1041_v48  ;;  %v415_v48 = vadd.f32 %v369_v63, %v1533_v51 }
 0x20e   :  { %1083 = vpow2.f32 %v1042_v43 }
 0x213   :  { %v1082_v47 = vpop.eup %1081 }
 0x214   :  { %v1084_v52 = vpop.eup %1083  ;;  %v376_v46 = vadd.f32 1.0, %v1082_v47  ;;  %v417_v47 = vrot.slane %v1040_v58, 2 }
 0x215   :  { %v399_v62 = vadd.f32 1.0, %v1084_v52 }
 0x216   :  { %1085 = vrcp.f32 %v376_v46  ;;  %v388_v55 = vand.u32 2147483648, %v376_v46  ;;  %v386_v42 = vand.u32 2147483647, %v376_v46  ;;  %vm382_vm1 = vweird.f32 %v376_v46 }
 0x217   :  { %1087 = vrcp.f32 %v399_v62  ;;  %vm405_vm5 = vweird.f32 %v399_v62  ;;  %v409_v35 = vand.u32 2147483647, %v399_v62 }
 0x218   :  { %v389_v50 = vor.u32 1.1754944e-38, %v388_v55  ;;  %vm387_vm3 = vcmp.eq.f32.partialorder %v386_v42, 8.507059e+37 }
 0x219   :  { %vm410_vm7 = vcmp.eq.f32.partialorder %v409_v35, 8.507059e+37 }
 0x21c   :  { %v1086_v49 = vpop.eup %1085 }
 0x21d   :  { %v1088_v53 = vpop.eup %1087  ;;  %v378_v57 = vmul.f32 %v1086_v49, %v376_v46  ;;  %vm383_vm0 = vweird.f32 %v1086_v49 }
 0x21e   :  { %v401_v61 = vmul.f32 %v1088_v53, %v399_v62  ;;  %vm384_vm2 = vmor %vm382_vm1, %vm383_vm0  ;;  %vm406_vm4 = vweird.f32 %v1088_v53 }
 0x21f   :  { %v379_v56 = vsub.f32 1.0, %v378_v57  ;;  %vm407_vm6 = vmor %vm405_vm5, %vm406_vm4 }
 0x220   :  { %v402_v60 = vsub.f32 1.0, %v401_v61 }
 0x221   :  { %v380_v41 = vmul.f32 %v1086_v49, %v379_v56  ;;  %v411_v56 = vand.u32 2147483648, %v399_v62 }
 0x222   :  { %v403_v38 = vmul.f32 %v1088_v53, %v402_v60 }
 0x223   :  { %v381_v59 = vadd.f32 %v1086_v49, %v380_v41  ;;  %v412_v55 = vor.u32 1.1754944e-38, %v411_v56  ;;  %v1145_v56 = vld [vmem:[#allocation2 + $0x150] sm:$0xff] }
 0x224   :  { %v404_v36 = vadd.f32 %v1088_v53, %v403_v38 }
 0x225   :  { %v385_v43 = vsel %vm384_vm2, %v1086_v49, %v381_v59 }
 0x226   :  { %v390_v52 = vsel %vm387_vm3, %v389_v50, %v385_v43  ;;  %v408_v41 = vsel %vm407_vm6, %v1088_v53, %v404_v36  ;;  %v1716_v43 = vld [vmem:[#allocation2 + $0x178] sm:$0xff] }
 0x227   :  { %v416_v39 = vmul.f32 %v415_v48, %v390_v52  ;;  %v413_v49 = vsel %vm410_vm7, %v412_v55, %v408_v41  ;;  %v1143_v52 = vld [vmem:[#allocation2 + $0x170] sm:$0xff]  ;;  %v1146_v41 = vld [vmem:[#allocation2 + $0x158] sm:$0xff] }
 0x228   :  { %v1148_v55 = vld [vmem:[#allocation2 + $0x138] sm:$0xff] }
 0x229   :  { %v419_v57 = vadd.f32 %v417_v47, %v416_v39  ;;  %v1142_v47 = vld [vmem:[#allocation2 + $0x168] sm:$0xff] }
 0x22b   :  { %1089 = vtanh.f32 %v419_v57  ;;  %v1719_v57 = vld [vmem:[#allocation2 + $0x160] sm:$0xff] }
 0x231   :  { %v1090_v46 = vpop.eup %1089 }
 0x232   :  { %v421_v61 = vsub.f32 %v1595_v54, %v1090_v46 }
 0x234   :  { %v422_v42 = vmul.f32 %v421_v61, %v413_v49  ;;  %v1149_v61 = vld [vmem:[#allocation2 + $0x140] sm:$0xff]  ;;  %v1725_v49 = vld [vmem:[#allocation2 + $0x130] sm:$0xff] }
 0x236   :  { %v1653_v58 = vadd.f32 %v1090_v46, %v422_v42  ;;  %v1722_v46 = vld [vmem:[#allocation2 + $0x148] sm:$0xff]  ;;  %v1151_v42 = vld [vmem:[#allocation2 + $0x120] sm:$0xff] }
 0x238   :  { %442 = vmatmul.f32.vlgmr.msra.gmra.mxu1 %v1653_v58  ;;  %462 = vmatmul.f32.vlgmr.msra.gmra.mxu2 %v1653_v58 }
 0x239   :  { %482 = vmatmul.f32.vlgmr.msra.gmra.mxu3 %v1653_v58  ;;  %694 = vmatpush.msra.mxu1 %v1282_v12 }
 0x23a   :  { %768 = vmatpush.msra.mxu2 %v1247_v0  ;;  %788 = vmatpush.msra.mxu3 %v1249_v1  ;;  %v1878_v0 = vld [vmem:[#allocation11_spill] sm:$0xff]  ;;  %v1879_v1 = vld [vmem:[#allocation5_spill] sm:$0xff] }
 0x23b   :  { %695 = vmatpush.msra.mxu1 %v1287_v13 }
 0x23c   :  { %769 = vmatpush.msra.mxu2 %v1251_v2  ;;  %789 = vmatpush.msra.mxu3 %v1255_v3  ;;  %v1880_v2 = vld [vmem:[#allocation6_spill] sm:$0xff]  ;;  %v1881_v3 = vld [vmem:[#allocation12_spill] sm:$0xff] }
 0x23d   :  { %696 = vmatpush.msra.mxu1 %v1297_v16 }
 0x23e   :  { %770 = vmatpush.msra.mxu2 %v1257_v4  ;;  %790 = vmatpush.msra.mxu3 %v1259_v5  ;;  %v1882_v4 = vld [vmem:[#allocation7_spill] sm:$0xff]  ;;  %v1883_v5 = vld [vmem:[#allocation8_spill] sm:$0xff] }
 0x23f   :  { %697 = vmatpush.msra.mxu1 %v1307_v19 }
 0x240   :  { %771 = vmatpush.msra.mxu2 %v1264_v6  ;;  %791 = vmatpush.msra.mxu3 %v1266_v7  ;;  %v1884_v6 = vld [vmem:[#allocation13_spill] sm:$0xff] }
 0x241   :  { %698 = vmatpush.msra.mxu1 %v1317_v22  ;;  %v1885_v7 = vld [vmem:[#allocation9_spill] sm:$0xff] }
 0x242   :  { %772 = vmatpush.msra.mxu2 %v1271_v8  ;;  %792 = vmatpush.msra.mxu3 %v1273_v9  ;;  %v1886_v8 = vld [vmem:[#allocation10_spill] sm:$0xff] }
 0x243   :  { %699 = vmatpush.msra.mxu1 %v1327_v25  ;;  %v1043_v9 = vld [vmem:[%s1826_s0 + $0x3] ss:$8 sm:$0x7] }
 0x244   :  { %773 = vmatpush.msra.mxu2 %v1278_v10  ;;  %793 = vmatpush.msra.mxu3 %v1280_v11  ;;  %v507_v13 = vrot.slane %v1043_v9, 1 }
 0x245   :  { %700 = vmatpush.msra.mxu1 %v1337_v28 }
 0x246   :  { %774 = vmatpush.msra.mxu2 %v1289_v14  ;;  %794 = vmatpush.msra.mxu3 %v1291_v15 }
 0x247   :  { %701 = vmatpush.msra.mxu1 %v1347_v31  ;;  %v531_v31 = vrot.slane %v1043_v9, 2 }
 0x248   :  { %775 = vmatpush.msra.mxu2 %v1299_v17  ;;  %795 = vmatpush.msra.mxu3 %v1301_v18 }
 0x249   :  { %702 = vmatpush.msra.mxu1 %v1357_v34 }
 0x24a   :  { %776 = vmatpush.msra.mxu2 %v1309_v20  ;;  %796 = vmatpush.msra.mxu3 %v1311_v21 }
 0x24b   :  { %703 = vmatpush.msra.mxu1 %v1367_v37 }
 0x24c   :  { %777 = vmatpush.msra.mxu2 %v1319_v23  ;;  %797 = vmatpush.msra.mxu3 %v1321_v24 }
 0x24d   :  { %704 = vmatpush.msra.mxu1 %v1377_v40 }
 0x24e   :  { %778 = vmatpush.msra.mxu2 %v1329_v26  ;;  %798 = vmatpush.msra.mxu3 %v1331_v27 }
 0x24f   :  { %705 = vmatpush.msra.mxu1 %v1393_v44 }
 0x250   :  { %779 = vmatpush.msra.mxu2 %v1339_v29  ;;  %799 = vmatpush.msra.mxu3 %v1341_v30 }
 0x251   :  { %706 = vmatpush.msra.mxu1 %v1400_v45 }
 0x252   :  { %780 = vmatpush.msra.mxu2 %v1349_v32  ;;  %800 = vmatpush.msra.mxu3 %v1351_v33 }
 0x253   :  { %707 = vmatpush.msra.mxu1 %v1878_v0  ;;  %v1152_v0 = vld [vmem:[#allocation2 + $0x128] sm:$0xff] }
 0x254   :  { %781 = vmatpush.msra.mxu2 %v1879_v1  ;;  %801 = vmatpush.msra.mxu3 %v1880_v2  ;;  %v1728_v1 = vld [vmem:[#allocation2 + $0x118] sm:$0xff]  ;;  %v1154_v2 = vld [vmem:[#allocation2 + $0x108] sm:$0xff] }
 0x255   :  { %708 = vmatpush.msra.mxu1 %v1881_v3  ;;  %v1155_v3 = vld [vmem:[#allocation2 + $0x110] sm:$0xff] }
 0x256   :  { %782 = vmatpush.msra.mxu2 %v1882_v4  ;;  %802 = vmatpush.msra.mxu3 %v1883_v5  ;;  %v1731_v4 = vld [vmem:[#allocation2 + $0x100] sm:$0xff]  ;;  %v1157_v5 = vld [vmem:[#allocation2 + $0xf0] sm:$0xff] }
 0x257   :  { %709 = vmatpush.msra.mxu1 %v1884_v6  ;;  %v1158_v6 = vld [vmem:[#allocation2 + $0xf8] sm:$0xff] }
 0x258   :  { %783 = vmatpush.msra.mxu2 %v1885_v7  ;;  %803 = vmatpush.msra.mxu3 %v1886_v8  ;;  %v1734_v7 = vld [vmem:[#allocation2 + $0xe8] sm:$0xff]  ;;  %v1160_v8 = vld [vmem:[#allocation2 + $0xd8] sm:$0xff] }
 0x2b5   :  { %v443_v10 = vpop.f32.mrf.mxu1 }
 0x2b6   :  { %v486_v11 = vadd.f32 %v1043_v9, %v443_v10  ;;  %v1161_v9 = vld [vmem:[#allocation2 + $0xe0] sm:$0xff]  ;;  %v1737_v10 = vld [vmem:[#allocation2 + $0xd0] sm:$0xff] }
 0x2b8   :  { %v1044_v12 = vmul.f32 -1.442695, %v486_v11  ;;  %v1163_v11 = vld [vmem:[#allocation2 + $0xc0] sm:$0xff] }
 0x2ba   :  { %1091 = vpow2.f32 %v1044_v12  ;;  %v1164_v12 = vld [vmem:[#allocation2 + $0xc8] sm:$0xff] }
 0x2bb   :  { %v463_v14 = vpop.f32.mrf.mxu2 }
 0x2bc   :  { %v509_v15 = vadd.f32 %v507_v13, %v463_v14  ;;  %v483_v28 = vpop.f32.mrf.mxu3  ;;  %v1740_v13 = vld [vmem:[#allocation2 + $0xb8] sm:$0xff]  ;;  %v1166_v14 = vld [vmem:[#allocation2 + $0xa8] sm:$0xff] }
 0x2bd   :  { %v529_v37 = vadd.f32 %v483_v28, %v1533_v51  ;;  %v1755_v28 = vld [vmem:[#allocation2 + $0x40] sm:$0xff] }
 0x2be   :  { %v1045_v16 = vmul.f32 -1.442695, %v509_v15  ;;  %v1167_v15 = vld [vmem:[#allocation2 + $0xb0] sm:$0xff] }
 0x2c0   :  { %v1092_v17 = vpop.eup %1091  ;;  %1093 = vpow2.f32 %v1045_v16  ;;  %v1743_v16 = vld [vmem:[#allocation2 + $0xa0] sm:$0xff] }
 0x2c1   :  { %v490_v18 = vadd.f32 1.0, %v1092_v17  ;;  %v1169_v17 = vld [vmem:[#allocation2 + $0x90] sm:$0xff] }
 0x2c3   :  { %1095 = vrcp.f32 %v490_v18  ;;  %v502_v24 = vand.u32 2147483648, %v490_v18  ;;  %v500_v26 = vand.u32 2147483647, %v490_v18  ;;  %vm496_vm9 = vweird.f32 %v490_v18 }
 0x2c5   :  { %v503_v32 = vor.u32 1.1754944e-38, %v502_v24  ;;  %vm501_vm11 = vcmp.eq.f32.partialorder %v500_v26, 8.507059e+37  ;;  %v1176_v24 = vld [vmem:[#allocation2 + $0x68] sm:$0xff] }
 0x2c6   :  { %v1094_v19 = vpop.eup %1093  ;;  %v1178_v26 = vld [vmem:[#allocation2 + $0x48] sm:$0xff] }
 0x2c7   :  { %v513_v20 = vadd.f32 1.0, %v1094_v19  ;;  %v1746_v19 = vld [vmem:[#allocation2 + $0x88] sm:$0xff] }
 0x2c9   :  { %v1096_v21 = vpop.eup %1095  ;;  %1097 = vrcp.f32 %v513_v20  ;;  %v525_v36 = vand.u32 2147483648, %v513_v20  ;;  %vm519_vm13 = vweird.f32 %v513_v20  ;;  %v523_v38 = vand.u32 2147483647, %v513_v20 }
 0x2ca   :  { %v492_v22 = vmul.f32 %v1096_v21, %v490_v18  ;;  %vm497_vm8 = vweird.f32 %v1096_v21  ;;  %v1170_v18 = vld [vmem:[#allocation2 + $0x98] sm:$0xff] }
 0x2cb   :  { %vm498_vm10 = vmor %vm496_vm9, %vm497_vm8  ;;  %v526_v63 = vor.u32 1.1754944e-38, %v525_v36  ;;  %vm524_vm15 = vcmp.eq.f32.partialorder %v523_v38, 8.507059e+37 }
 0x2cc   :  { %v493_v23 = vsub.f32 1.0, %v492_v22  ;;  %v1749_v22 = vld [vmem:[#allocation2 + $0x70] sm:$0xff] }
 0x2ce   :  { %v494_v25 = vmul.f32 %v1096_v21, %v493_v23  ;;  %v1175_v23 = vld [vmem:[#allocation2 + $0x60] sm:$0xff] }
 0x2cf   :  { %v1098_v27 = vpop.eup %1097 }
 0x2d0   :  { %v515_v29 = vmul.f32 %v1098_v27, %v513_v20  ;;  %v495_v30 = vadd.f32 %v1096_v21, %v494_v25  ;;  %vm520_vm12 = vweird.f32 %v1098_v27  ;;  %v1172_v20 = vld [vmem:[#allocation2 + $0x78] sm:$0xff] }
 0x2d1   :  { %vm521_vm14 = vmor %vm519_vm13, %vm520_vm12  ;;  %v1752_v25 = vld [vmem:[#allocation2 + $0x58] sm:$0xff] }
 0x2d2   :  { %v516_v33 = vsub.f32 1.0, %v515_v29  ;;  %v499_v34 = vsel %vm498_vm10, %v1096_v21, %v495_v30  ;;  %v1173_v21 = vld [vmem:[#allocation2 + $0x80] sm:$0xff]  ;;  %v1181_v29 = vld [vmem:[#allocation2 + $0x30] sm:$0xff]  ;;  %v1182_v30 = vld [vmem:[#allocation2 + $0x38] sm:$0xff] }
 0x2d3   :  { %v504_v40 = vsel %vm501_vm11, %v503_v32, %v499_v34  ;;  %v1184_v32 = vld [vmem:[#allocation2 + $0x18] sm:$0xff]  ;;  %v1761_v34 = vld [vmem:[#allocation2 + $0x10] sm:$0xff] }
 0x2d4   :  { %v530_v44 = vmul.f32 %v529_v37, %v504_v40  ;;  %v517_v45 = vmul.f32 %v1098_v27, %v516_v33  ;;  %v1185_v33 = vld [vmem:[#allocation2 + $0x20] sm:$0xff]  ;;  %v1188_v40 = vld [vmem:[#allocation2 + $0x8] sm:$0xff] }
 0x2d5   :  { %v1187_v37 = vld [vmem:[#allocation2] sm:$0xff] }
 0x2d6   :  { %v533_v53 = vadd.f32 %v531_v31, %v530_v44  ;;  %v518_v35 = vadd.f32 %v1098_v27, %v517_v45  ;;  %v1758_v31 = vld [vmem:[#allocation2 + $0x28] sm:$0xff] }
 0x2d7   :  { %v1046_v44 = vld [vmem:[%s1826_s0 + $0x4] ss:$8 sm:$0x7] }
 0x2d8   :  { %1099 = vtanh.f32 %v533_v53  ;;  %v522_v39 = vsel %vm521_vm14, %v1098_v27, %v518_v35  ;;  %v1179_v27 = vld [vmem:[#allocation2 + $0x50] sm:$0xff]  ;;  %v621_v45 = vrot.slane %v1046_v44, 1 }
 0x2d9   :  { %v527_v50 = vsel %vm524_vm15, %v526_v63, %v522_v39 }
 0x2de   :  { %v1100_v62 = vpop.eup %1099 }
 0x2df   :  { %v535_v59 = vsub.f32 %v1653_v58, %v1100_v62 }
 0x2e1   :  { %v536_v60 = vmul.f32 %v535_v59, %v527_v50 }
 0x2e3   :  { %v1711_v48 = vadd.f32 %v1100_v62, %v536_v60 }
 0x2e5   :  { %556 = vmatmul.f32.vlgmr.msrb.gmra.mxu0 %v1711_v48  ;;  %576 = vmatmul.f32.vlgmr.msrb.gmra.mxu1 %v1711_v48 }
 0x2e6   :  { %596 = vmatmul.f32.vlgmr.msrb.gmra.mxu2 %v1711_v48  ;;  %808 = vmatpush.msrb.mxu0 %v1716_v43 }
 0x2e7   :  { %882 = vmatpush.msrb.mxu1 %v1142_v47  ;;  %902 = vmatpush.msrb.mxu2 %v1143_v52 }
 0x2e8   :  { %809 = vmatpush.msrb.mxu0 %v1719_v57 }
 0x2e9   :  { %883 = vmatpush.msrb.mxu1 %v1145_v56  ;;  %903 = vmatpush.msrb.mxu2 %v1146_v41 }
 0x2ea   :  { %810 = vmatpush.msrb.mxu0 %v1722_v46 }
 0x2eb   :  { %884 = vmatpush.msrb.mxu1 %v1148_v55  ;;  %904 = vmatpush.msrb.mxu2 %v1149_v61 }
 0x2ec   :  { %811 = vmatpush.msrb.mxu0 %v1725_v49 }
 0x2ed   :  { %885 = vmatpush.msrb.mxu1 %v1151_v42  ;;  %905 = vmatpush.msrb.mxu2 %v1152_v0 }
 0x2ee   :  { %812 = vmatpush.msrb.mxu0 %v1728_v1 }
 0x2ef   :  { %886 = vmatpush.msrb.mxu1 %v1154_v2  ;;  %906 = vmatpush.msrb.mxu2 %v1155_v3 }
 0x2f0   :  { %813 = vmatpush.msrb.mxu0 %v1731_v4 }
 0x2f1   :  { %887 = vmatpush.msrb.mxu1 %v1157_v5  ;;  %907 = vmatpush.msrb.mxu2 %v1158_v6 }
 0x2f2   :  { %814 = vmatpush.msrb.mxu0 %v1734_v7 }
 0x2f3   :  { %888 = vmatpush.msrb.mxu1 %v1160_v8  ;;  %908 = vmatpush.msrb.mxu2 %v1161_v9  ;;  %v645_v8 = vrot.slane %v1046_v44, 2 }
 0x2f4   :  { %815 = vmatpush.msrb.mxu0 %v1737_v10 }
 0x2f5   :  { %889 = vmatpush.msrb.mxu1 %v1163_v11  ;;  %909 = vmatpush.msrb.mxu2 %v1164_v12 }
 0x2f6   :  { %816 = vmatpush.msrb.mxu0 %v1740_v13 }
 0x2f7   :  { %890 = vmatpush.msrb.mxu1 %v1166_v14  ;;  %910 = vmatpush.msrb.mxu2 %v1167_v15 }
 0x2f8   :  { %817 = vmatpush.msrb.mxu0 %v1743_v16 }
 0x2f9   :  { %891 = vmatpush.msrb.mxu1 %v1169_v17  ;;  %911 = vmatpush.msrb.mxu2 %v1170_v18 }
 0x2fa   :  { %818 = vmatpush.msrb.mxu0 %v1746_v19 }
 0x2fb   :  { %892 = vmatpush.msrb.mxu1 %v1172_v20  ;;  %912 = vmatpush.msrb.mxu2 %v1173_v21 }
 0x2fc   :  { %819 = vmatpush.msrb.mxu0 %v1749_v22 }
 0x2fd   :  { %893 = vmatpush.msrb.mxu1 %v1175_v23  ;;  %913 = vmatpush.msrb.mxu2 %v1176_v24 }
 0x2fe   :  { %820 = vmatpush.msrb.mxu0 %v1752_v25 }
 0x2ff   :  { %894 = vmatpush.msrb.mxu1 %v1178_v26  ;;  %914 = vmatpush.msrb.mxu2 %v1179_v27 }
 0x300   :  { %821 = vmatpush.msrb.mxu0 %v1755_v28 }
 0x301   :  { %895 = vmatpush.msrb.mxu1 %v1181_v29  ;;  %915 = vmatpush.msrb.mxu2 %v1182_v30 }
 0x302   :  { %822 = vmatpush.msrb.mxu0 %v1758_v31 }
 0x303   :  { %896 = vmatpush.msrb.mxu1 %v1184_v32  ;;  %916 = vmatpush.msrb.mxu2 %v1185_v33 }
 0x304   :  { %823 = vmatpush.msrb.mxu0 %v1761_v34 }
 0x305   :  { %897 = vmatpush.msrb.mxu1 %v1187_v37  ;;  %917 = vmatpush.msrb.mxu2 %v1188_v40 }
 0x362   :  { %v557_v53 = vpop.f32.mrf.mxu0  ;;  %v577_v35 = vpop.f32.mrf.mxu1 }
 0x363   :  { %v600_v36 = vadd.f32 %v1046_v44, %v557_v53  ;;  %v623_v38 = vadd.f32 %v621_v45, %v577_v35 }
 0x365   :  { %v1047_v39 = vmul.f32 -1.442695, %v600_v36  ;;  %v1048_v62 = vmul.f32 -1.442695, %v623_v38 }
 0x367   :  { %1101 = vpow2.f32 %v1047_v39 }
 0x368   :  { %1103 = vpow2.f32 %v1048_v62 }
 0x369   :  { %v597_v2 = vpop.f32.mrf.mxu2 }
 0x36a   :  { %v643_v11 = vadd.f32 %v597_v2, %v1533_v51 }
 0x36d   :  { %v1102_v63 = vpop.eup %1101 }
 0x36e   :  { %v1104_v59 = vpop.eup %1103  ;;  %v604_v50 = vadd.f32 1.0, %v1102_v63 }
 0x36f   :  { %v627_v60 = vadd.f32 1.0, %v1104_v59 }
 0x370   :  { %1105 = vrcp.f32 %v604_v50  ;;  %v616_v61 = vand.u32 2147483648, %v604_v50  ;;  %v614_v0 = vand.u32 2147483647, %v604_v50  ;;  %vm610_vm1 = vweird.f32 %v604_v50 }
 0x371   :  { %1107 = vrcp.f32 %v627_v60  ;;  %v639_v20 = vand.u32 2147483648, %v627_v60  ;;  %vm633_vm5 = vweird.f32 %v627_v60  ;;  %v637_v21 = vand.u32 2147483647, %v627_v60 }
 0x372   :  { %v617_v6 = vor.u32 1.1754944e-38, %v616_v61  ;;  %vm615_vm3 = vcmp.eq.f32.partialorder %v614_v0, 8.507059e+37 }
 0x373   :  { %v640_v26 = vor.u32 1.1754944e-38, %v639_v20  ;;  %vm638_vm7 = vcmp.eq.f32.partialorder %v637_v21, 8.507059e+37 }
 0x376   :  { %v1106_v47 = vpop.eup %1105 }
 0x377   :  { %v1108_v52 = vpop.eup %1107  ;;  %v606_v56 = vmul.f32 %v1106_v47, %v604_v50  ;;  %vm611_vm0 = vweird.f32 %v1106_v47 }
 0x378   :  { %v629_v55 = vmul.f32 %v1108_v52, %v627_v60  ;;  %vm612_vm2 = vmor %vm610_vm1, %vm611_vm0  ;;  %vm634_vm4 = vweird.f32 %v1108_v52 }
 0x379   :  { %v607_v41 = vsub.f32 1.0, %v606_v56  ;;  %vm635_vm6 = vmor %vm633_vm5, %vm634_vm4 }
 0x37a   :  { %v630_v5 = vsub.f32 1.0, %v629_v55 }
 0x37b   :  { %v608_v42 = vmul.f32 %v1106_v47, %v607_v41 }
 0x37c   :  { %v631_v15 = vmul.f32 %v1108_v52, %v630_v5 }
 0x37d   :  { %v609_v3 = vadd.f32 %v1106_v47, %v608_v42 }
 0x37e   :  { %v632_v18 = vadd.f32 %v1108_v52, %v631_v15 }
 0x37f   :  { %v613_v9 = vsel %vm612_vm2, %v1106_v47, %v609_v3  ;;  %v1052_v3 = vld [vmem:[%s1826_s0 + $0x6] ss:$8 sm:$0x7] }
 0x380   :  { %v618_v12 = vsel %vm615_vm3, %v617_v6, %v613_v9  ;;  %v636_v23 = vsel %vm635_vm6, %v1108_v52, %v632_v18  ;;  %v849_v5 = vrot.slane %v1052_v3, 1 }
 0x381   :  { %v644_v14 = vmul.f32 %v643_v11, %v618_v12  ;;  %v641_v29 = vsel %vm638_vm7, %v640_v26, %v636_v23 }
 0x383   :  { %v647_v17 = vadd.f32 %v645_v8, %v644_v14 }
 0x385   :  { %1109 = vtanh.f32 %v647_v17 }
 0x38b   :  { %v1110_v24 = vpop.eup %1109 }
 0x38c   :  { %v649_v27 = vsub.f32 %v1711_v48, %v1110_v24 }
 0x38e   :  { %v650_v30 = vmul.f32 %v649_v27, %v641_v29 }
 0x390   :  { %v1769_v32 = vadd.f32 %v1110_v24, %v650_v30 }
 0x392   :  { %670 = vmatmul.f32.vlgmr.msrb.gmra.mxu3 %v1769_v32  ;;  %690 = vmatmul.f32.vlgmr.msra.gmra.mxu0 %v1769_v32 }
 0x393   :  { %710 = vmatmul.f32.vlgmr.msra.gmra.mxu1 %v1769_v32  ;;  %922 = vmatpush.msrb.mxu3 %v1716_v43  ;;  %v1049_v43 = vld [vmem:[%s1826_s0 + $0x5] ss:$8 sm:$0x7] }
 0x394   :  { %v759_v38 = vrot.slane %v1049_v43, 2 }
 0x395   :  { %923 = vmatpush.msrb.mxu3 %v1719_v57  ;;  %v735_v57 = vrot.slane %v1049_v43, 1 }
 0x397   :  { %924 = vmatpush.msrb.mxu3 %v1722_v46 }
 0x399   :  { %925 = vmatpush.msrb.mxu3 %v1725_v49 }
 0x39b   :  { %926 = vmatpush.msrb.mxu3 %v1728_v1 }
 0x39d   :  { %927 = vmatpush.msrb.mxu3 %v1731_v4 }
 0x39f   :  { %928 = vmatpush.msrb.mxu3 %v1734_v7 }
 0x3a1   :  { %929 = vmatpush.msrb.mxu3 %v1737_v10 }
 0x3a3   :  { %930 = vmatpush.msrb.mxu3 %v1740_v13 }
 0x3a5   :  { %931 = vmatpush.msrb.mxu3 %v1743_v16 }
 0x3a7   :  { %932 = vmatpush.msrb.mxu3 %v1746_v19 }
 0x3a9   :  { %933 = vmatpush.msrb.mxu3 %v1749_v22 }
 0x3ab   :  { %934 = vmatpush.msrb.mxu3 %v1752_v25 }
 0x3ad   :  { %935 = vmatpush.msrb.mxu3 %v1755_v28 }
 0x3af   :  { %936 = vmatpush.msrb.mxu3 %v1758_v31 }
 0x3b1   :  { %937 = vmatpush.msrb.mxu3 %v1761_v34 }
 0x40f   :  { %v691_v46 = vpop.f32.mrf.mxu0 }
 0x410   :  { %v737_v49 = vadd.f32 %v735_v57, %v691_v46  ;;  %v711_v45 = vpop.f32.mrf.mxu1 }
 0x411   :  { %v757_v39 = vadd.f32 %v711_v45, %v1533_v51 }
 0x412   :  { %v1051_v1 = vmul.f32 -1.442695, %v737_v49 }
 0x414   :  { %1111 = vpow2.f32 %v1051_v1 }
 0x415   :  { %v671_v4 = vpop.f32.mrf.mxu3 }
 0x416   :  { %v714_v7 = vadd.f32 %v1049_v43, %v671_v4  ;;  %v1189_v4 = vld [vmem:[%s1828_s2] sm:$0x1] }
 0x418   :  { %v1050_v10 = vmul.f32 -1.442695, %v714_v7 }
 0x41a   :  { %1113 = vpow2.f32 %v1050_v10  ;;  %v1112_v13 = vpop.eup %1111 }
 0x41b   :  { %v741_v19 = vadd.f32 1.0, %v1112_v13  ;;  %v873_v13 = vrot.slane %v1052_v3, 2 }
 0x41d   :  { %v753_v52 = vand.u32 2147483648, %v741_v19  ;;  %vm747_vm13 = vweird.f32 %v741_v19  ;;  %v751_v56 = vand.u32 2147483647, %v741_v19 }
 0x41f   :  { %v754_v61 = vor.u32 1.1754944e-38, %v753_v52  ;;  %vm752_vm15 = vcmp.eq.f32.partialorder %v751_v56, 8.507059e+37 }
 0x420   :  { %v1114_v16 = vpop.eup %1113 }
 0x421   :  { %v718_v22 = vadd.f32 1.0, %v1114_v16 }
 0x423   :  { %1115 = vrcp.f32 %v718_v22  ;;  %v730_v37 = vand.u32 2147483648, %v718_v22  ;;  %v728_v44 = vand.u32 2147483647, %v718_v22  ;;  %vm724_vm9 = vweird.f32 %v718_v22 }
 0x424   :  { %1117 = vrcp.f32 %v741_v19 }
 0x425   :  { %v731_v36 = vor.u32 1.1754944e-38, %v730_v37  ;;  %vm729_vm11 = vcmp.eq.f32.partialorder %v728_v44, 8.507059e+37 }
 0x429   :  { %v1116_v25 = vpop.eup %1115 }
 0x42a   :  { %v1118_v28 = vpop.eup %1117  ;;  %v720_v31 = vmul.f32 %v1116_v25, %v718_v22  ;;  %vm725_vm8 = vweird.f32 %v1116_v25 }
 0x42b   :  { %v743_v34 = vmul.f32 %v1118_v28, %v741_v19  ;;  %vm726_vm10 = vmor %vm724_vm9, %vm725_vm8  ;;  %vm748_vm12 = vweird.f32 %v1118_v28 }
 0x42c   :  { %v721_v33 = vsub.f32 1.0, %v720_v31  ;;  %vm749_vm14 = vmor %vm747_vm13, %vm748_vm12 }
 0x42d   :  { %v744_v35 = vsub.f32 1.0, %v743_v34 }
 0x42e   :  { %v722_v40 = vmul.f32 %v1116_v25, %v721_v33 }
 0x42f   :  { %v745_v50 = vmul.f32 %v1118_v28, %v744_v35 }
 0x430   :  { %v723_v53 = vadd.f32 %v1116_v25, %v722_v40 }
 0x431   :  { %v746_v47 = vadd.f32 %v1118_v28, %v745_v50 }
 0x432   :  { %v727_v62 = vsel %vm726_vm10, %v1116_v25, %v723_v53 }
 0x433   :  { %v732_v63 = vsel %vm729_vm11, %v731_v36, %v727_v62  ;;  %v750_v41 = vsel %vm749_vm14, %v1118_v28, %v746_v47  ;;  %v1055_v36 = vld [vmem:[%s1826_s0 + $0x7] ss:$8 sm:$0x7] }
 0x434   :  { %v758_v59 = vmul.f32 %v757_v39, %v732_v63  ;;  %v755_v51 = vsel %vm752_vm15, %v754_v61, %v750_v41  ;;  %v963_v63 = vrot.slane %v1055_v36, 1  ;;  %vm1015_vm15 = vcmask 1040384  }
 0x436   :  { %v761_v60 = vadd.f32 %v759_v38, %v758_v59 }
 0x438   :  { %1119 = vtanh.f32 %v761_v60 }
 0x43e   :  { %v1120_v55 = vpop.eup %1119 }
 0x43f   :  { %v763_v42 = vsub.f32 %v1769_v32, %v1120_v55 }
 0x441   :  { %v764_v0 = vmul.f32 %v763_v42, %v755_v51 }
 0x443   :  { %v1795_v2 = vadd.f32 %v1120_v55, %v764_v0 }
 0x445   :  { %784 = vmatmul.f32.vlgmr.msra.gmra.mxu2 %v1795_v2  ;;  %804 = vmatmul.f32.vlgmr.msra.gmra.mxu3 %v1795_v2 }
 0x446   :  { %824 = vmatmul.f32.vlgmr.msrb.gmra.mxu0 %v1795_v2 }
 0x4c3   :  { %v825_v57 = vpop.f32.mrf.mxu0 }
 0x4c4   :  { %v871_v7 = vadd.f32 %v1189_v4, %v825_v57  ;;  %v998_v57 = vperm.slane %v1653_v58, 0 }
 0x4c8   :  { %v785_v6 = vpop.f32.mrf.mxu2  ;;  %v805_v8 = vpop.f32.mrf.mxu3 }
 0x4c9   :  { %v828_v9 = vadd.f32 %v1052_v3, %v785_v6  ;;  %v851_v11 = vadd.f32 %v849_v5, %v805_v8 }
 0x4cb   :  { %v1053_v12 = vmul.f32 -1.442695, %v828_v9  ;;  %v1054_v14 = vmul.f32 -1.442695, %v851_v11  ;;  %v987_v11 = vrot.slane %v1055_v36, 2 }
 0x4cd   :  { %1121 = vpow2.f32 %v1053_v12 }
 0x4ce   :  { %1123 = vpow2.f32 %v1054_v14 }
 0x4d3   :  { %v1122_v15 = vpop.eup %1121 }
 0x4d4   :  { %v1124_v17 = vpop.eup %1123  ;;  %v832_v18 = vadd.f32 1.0, %v1122_v15 }
 0x4d5   :  { %v855_v20 = vadd.f32 1.0, %v1124_v17 }
 0x4d6   :  { %1125 = vrcp.f32 %v832_v18  ;;  %v844_v27 = vand.u32 2147483648, %v832_v18  ;;  %v842_v43 = vand.u32 2147483647, %v832_v18  ;;  %vm838_vm1 = vweird.f32 %v832_v18 }
 0x4d7   :  { %1127 = vrcp.f32 %v855_v20  ;;  %v867_v31 = vand.u32 2147483648, %v855_v20  ;;  %vm861_vm5 = vweird.f32 %v855_v20  ;;  %v865_v33 = vand.u32 2147483647, %v855_v20 }
 0x4d8   :  { %v845_v49 = vor.u32 1.1754944e-38, %v844_v27  ;;  %vm843_vm3 = vcmp.eq.f32.partialorder %v842_v43, 8.507059e+37 }
 0x4d9   :  { %v868_v40 = vor.u32 1.1754944e-38, %v867_v31  ;;  %vm866_vm7 = vcmp.eq.f32.partialorder %v865_v33, 8.507059e+37 }
 0x4dc   :  { %v1126_v21 = vpop.eup %1125 }
 0x4dd   :  { %v1128_v23 = vpop.eup %1127  ;;  %v834_v24 = vmul.f32 %v1126_v21, %v832_v18  ;;  %vm839_vm0 = vweird.f32 %v1126_v21 }
 0x4de   :  { %v857_v29 = vmul.f32 %v1128_v23, %v855_v20  ;;  %vm840_vm2 = vmor %vm838_vm1, %vm839_vm0  ;;  %vm862_vm4 = vweird.f32 %v1128_v23  ;;  %vm1017_vm1 = vcmask 1041408  }
 0x4df   :  { %v835_v26 = vsub.f32 1.0, %v834_v24  ;;  %vm863_vm6 = vmor %vm861_vm5, %vm862_vm4  ;;  %vm1023_vm4 = vcmask 1044480   ;;  %vm1025_vm5 = vcmask 1045504  }
 0x4e0   :  { %v858_v1 = vsub.f32 1.0, %v857_v29  ;;  %v995_v29 = vperm.slane %v1595_v54, 0  ;;  %v1007_v54 = vperm.slane %v1795_v2, 0 }
 0x4e1   :  { %v836_v30 = vmul.f32 %v1126_v21, %v835_v26 }
 0x4e2   :  { %v859_v22 = vmul.f32 %v1128_v23, %v858_v1 }
 0x4e3   :  { %v837_v46 = vadd.f32 %v1126_v21, %v836_v30 }
 0x4e4   :  { %v860_v28 = vadd.f32 %v1128_v23, %v859_v22 }
 0x4e5   :  { %v841_v10 = vsel %vm840_vm2, %v1126_v21, %v837_v46  ;;  %vm1019_vm2 = vcmask 1042432  }
 0x4e6   :  { %v846_v16 = vsel %vm843_vm3, %v845_v49, %v841_v10  ;;  %v864_v34 = vsel %vm863_vm6, %v1128_v23, %v860_v28  ;;  %v1001_v49 = vperm.slane %v1711_v48, 0  ;;  %v1887_v10 = vld [vmem:[#allocation14_spill] sm:$0xff]  ;;  %vm1021_vm3 = vcmask 1043456  }
 0x4e7   :  { %v872_v19 = vmul.f32 %v871_v7, %v846_v16  ;;  %v869_v45 = vsel %vm866_vm7, %v868_v40, %v864_v34  ;;  %vm1027_vm6 = vcmask 1046528  }
 0x4e9   :  { %v875_v25 = vadd.f32 %v873_v13, %v872_v19  ;;  %v1016_v13 = vsel %vm1015_vm15, %v1887_v10, %v995_v29 }
 0x4ea   :  { %v1018_v58 = vsel %vm1017_vm1, %v1016_v13, %v998_v57 }
 0x4eb   :  { %1129 = vtanh.f32 %v875_v25  ;;  %v1020_v48 = vsel %vm1019_vm2, %v1018_v58, %v1001_v49 }
 0x4f1   :  { %v1130_v37 = vpop.eup %1129 }
 0x4f2   :  { %v877_v44 = vsub.f32 %v1795_v2, %v1130_v37 }
 0x4f4   :  { %v878_v53 = vmul.f32 %v877_v44, %v869_v45 }
 0x4f6   :  { %v1807_v35 = vadd.f32 %v1130_v37, %v878_v53 }
 0x4f8   :  { %898 = vmatmul.f32.vlgmr.msrb.gmra.mxu1 %v1807_v35  ;;  %918 = vmatmul.f32.vlgmr.msrb.gmra.mxu2 %v1807_v35  ;;  %v1010_v19 = vperm.slane %v1807_v35, 0 }
 0x4f9   :  { %938 = vmatmul.f32.vlgmr.msrb.gmra.mxu3 %v1807_v35 }
 0x575   :  { %v899_v38 = vpop.f32.mrf.mxu1 }
 0x576   :  { %v942_v39 = vadd.f32 %v1055_v36, %v899_v38 }
 0x578   :  { %v1056_v62 = vmul.f32 -1.442695, %v942_v39 }
 0x57a   :  { %1131 = vpow2.f32 %v1056_v62 }
 0x57b   :  { %v919_v59 = vpop.f32.mrf.mxu2 }
 0x57c   :  { %v965_v50 = vadd.f32 %v963_v63, %v919_v59  ;;  %v939_v6 = vpop.f32.mrf.mxu3 }
 0x57d   :  { %v985_v17 = vadd.f32 %v1189_v4, %v939_v6  ;;  %v1004_v4 = vperm.slane %v1769_v32, 0 }
 0x57e   :  { %v1057_v60 = vmul.f32 -1.442695, %v965_v50 }
 0x57f   :  { %v1022_v25 = vsel %vm1021_vm3, %v1020_v48, %v1004_v4 }
 0x580   :  { %v1132_v47 = vpop.eup %1131  ;;  %1133 = vpow2.f32 %v1057_v60  ;;  %v1024_v31 = vsel %vm1023_vm4, %v1022_v25, %v1007_v54 }
 0x581   :  { %v946_v52 = vadd.f32 1.0, %v1132_v47  ;;  %v1026_v32 = vsel %vm1025_vm5, %v1024_v31, %v1010_v19 }
 0x583   :  { %1135 = vrcp.f32 %v946_v52  ;;  %v958_v51 = vand.u32 2147483648, %v946_v52  ;;  %v956_v3 = vand.u32 2147483647, %v946_v52  ;;  %vm952_vm9 = vweird.f32 %v946_v52 }
 0x585   :  { %v959_v12 = vor.u32 1.1754944e-38, %v958_v51  ;;  %vm957_vm11 = vcmp.eq.f32.partialorder %v956_v3, 8.507059e+37 }
 0x586   :  { %v1134_v56 = vpop.eup %1133 }
 0x587   :  { %v969_v41 = vadd.f32 1.0, %v1134_v56 }
 0x589   :  { %v1136_v55 = vpop.eup %1135  ;;  %1137 = vrcp.f32 %v969_v41  ;;  %v981_v26 = vand.u32 2147483648, %v969_v41  ;;  %vm975_vm13 = vweird.f32 %v969_v41  ;;  %v979_v27 = vand.u32 2147483647, %v969_v41 }
 0x58a   :  { %v948_v61 = vmul.f32 %v1136_v55, %v946_v52  ;;  %vm953_vm8 = vweird.f32 %v1136_v55 }
 0x58b   :  { %vm954_vm10 = vmor %vm952_vm9, %vm953_vm8  ;;  %v982_v46 = vor.u32 1.1754944e-38, %v981_v26  ;;  %vm980_vm0 = vcmp.eq.f32.partialorder %v979_v27, 8.507059e+37 }
 0x58c   :  { %v949_v42 = vsub.f32 1.0, %v948_v61 }
 0x58e   :  { %v950_v0 = vmul.f32 %v1136_v55, %v949_v42 }
 0x58f   :  { %v1138_v5 = vpop.eup %1137 }
 0x590   :  { %v971_v8 = vmul.f32 %v1138_v5, %v969_v41  ;;  %v951_v9 = vadd.f32 %v1136_v55, %v950_v0  ;;  %vm976_vm12 = vweird.f32 %v1138_v5 }
 0x591   :  { %vm977_vm14 = vmor %vm975_vm13, %vm976_vm12 }
 0x592   :  { %v972_v14 = vsub.f32 1.0, %v971_v8  ;;  %v955_v15 = vsel %vm954_vm10, %v1136_v55, %v951_v9 }
 0x593   :  { %v960_v18 = vsel %vm957_vm11, %v959_v12, %v955_v15 }
 0x594   :  { %v986_v20 = vmul.f32 %v985_v17, %v960_v18  ;;  %v973_v21 = vmul.f32 %v1138_v5, %v972_v14 }
 0x596   :  { %v989_v23 = vadd.f32 %v987_v11, %v986_v20  ;;  %v974_v24 = vadd.f32 %v1138_v5, %v973_v21 }
 0x598   :  { %1139 = vtanh.f32 %v989_v23  ;;  %v978_v30 = vsel %vm977_vm14, %v1138_v5, %v974_v24 }
 0x599   :  { %v983_v7 = vsel %vm980_vm0, %v982_v46, %v978_v30 }
 0x59e   :  { %v1140_v43 = vpop.eup %1139 }
 0x59f   :  { %v991_v1 = vsub.f32 %v1807_v35, %v1140_v43 }
 0x5a1   :  { %v992_v16 = vmul.f32 %v991_v1, %v983_v7 }
 0x5a3   :  { %v993_v22 = vadd.f32 %v1140_v43, %v992_v16 }
 0x5a5   :  { %v1013_v28 = vperm.slane %v993_v22, 0 }
 0x5a7   :  { %v1028_v33 = vsel %vm1027_vm6, %v1026_v32, %v1013_v28 }
 0x5a8   :  { %1029 = vst [vmem:[%s1830_s4] sm:$0xff] %v1028_v33 }
 0x5a9   :  { %1034 = vsyncpa [#allocation3], 1 }

</bundles_post_ra>
